<compile_context>
chip_gen: v6e
topology: v6e:2x2x1
jax: 0.10.0
libtpu: 0.0.40
codegen_flags: <defaults>
</compile_context>

<pallas_src>
import math
import functools

import jax
import jax.numpy as jnp
from jax import lax
from jax.experimental import pallas as pl
from jax.experimental.pallas import tpu as pltpu


# ----------------------------------------------------------------------------
# Generation-aware VMEM budgeting & tile picking
# ----------------------------------------------------------------------------
def _vmem_limit_bytes():
    """~3/4 of physical VMEM: 48MiB on v7x (64MiB), 96MiB on v5e/v6e (128MiB),
    leaving headroom for double-buffering and compiler scratch."""
    cap = 128 * 1024 * 1024
    try:
        info = pltpu.get_tpu_info()
        cap = int(getattr(info, "vmem_capacity_bytes", cap))
    except Exception:
        pass
    return min((cap * 3) // 4, 96 * 1024 * 1024)


def _pick_tile(dim, target, align):
    """Largest multiple of `align` that divides `dim` and is <= target,
    falling back to the full dim (always a legal TPU block size)."""
    if dim <= target:
        return dim
    t = (min(target, dim) // align) * align
    while t >= align:
        if dim % t == 0:
            return t
        t -= align
    return dim


# ----------------------------------------------------------------------------
# Kernel 1: tiled, pipelined linear projection  y = x @ W + b
#   W is stored pre-transposed as (D_in, D_out) bf16; bias is (1, D_out) f32.
#   M/N/K grid, f32 accumulator scratch, bias added on the last K step.
# ----------------------------------------------------------------------------
def _linear_kernel(x_ref, w_ref, b_ref, o_ref, acc_ref):
    @pl.when(pl.program_id(2) == 0)
    def _():
        acc_ref[...] = jnp.zeros_like(acc_ref)

    acc_ref[...] += jnp.dot(x_ref[...].astype(jnp.bfloat16), w_ref[...],
                            preferred_element_type=jnp.float32)

    @pl.when(pl.program_id(2) == pl.num_programs(2) - 1)
    def _():
        o_ref[...] = (acc_ref[...] + b_ref[...]).astype(o_ref.dtype)


def linear_pallas(x, wt, b, *, block_m=512, block_n=512, block_k=512):
    """x: (M, D_in) f32, wt: (D_in, D_out) bf16 (pre-transposed), b: (D_out,) f32.
    Returns bf16 (M, D_out)."""
    M, K = x.shape
    N = wt.shape[1]
    bm = _pick_tile(M, block_m, 8)
    bn = _pick_tile(N, block_n, 128)
    bk = _pick_tile(K, block_k, 128)
    vlim = _vmem_limit_bytes()
    return pl.pallas_call(
        _linear_kernel,
        out_shape=jax.ShapeDtypeStruct((M, N), jnp.bfloat16),
        grid=(M // bm, N // bn, K // bk),
        in_specs=[
            pl.BlockSpec((bm, bk), lambda i, j, k: (i, k)),
            pl.BlockSpec((bk, bn), lambda i, j, k: (k, j)),
            pl.BlockSpec((1, bn), lambda i, j, k: (0, j)),
        ],
        out_specs=pl.BlockSpec((bm, bn), lambda i, j, k: (i, j)),
        scratch_shapes=[pltpu.VMEM((bm, bn), jnp.float32)],
        compiler_params=pltpu.CompilerParams(
            dimension_semantics=("parallel", "parallel", "arbitrary"),
            vmem_limit_bytes=vlim),
    )(x, wt, b.reshape(1, N))


# ----------------------------------------------------------------------------
# Kernel 2: fused QKV projection for self-attention.  Reads the x block from
# HBM ONCE per grid step, runs three MXU matmuls against it and writes Q/K/V
# as three separate lane-dense outputs (no concatenated slab, no unaligned
# lane slices anywhere downstream).
# ----------------------------------------------------------------------------
def _qkv_proj_kernel(x_ref, wq_ref, wk_ref, wv_ref, bq_ref, bk_ref, bv_ref,
                     oq_ref, ok_ref, ov_ref, accq_ref, acck_ref, accv_ref):
    @pl.when(pl.program_id(1) == 0)
    def _():
        accq_ref[...] = jnp.zeros_like(accq_ref)
        acck_ref[...] = jnp.zeros_like(acck_ref)
        accv_ref[...] = jnp.zeros_like(accv_ref)

    x = x_ref[...].astype(jnp.bfloat16)
    accq_ref[...] += jnp.dot(x, wq_ref[...], preferred_element_type=jnp.float32)
    acck_ref[...] += jnp.dot(x, wk_ref[...], preferred_element_type=jnp.float32)
    accv_ref[...] += jnp.dot(x, wv_ref[...], preferred_element_type=jnp.float32)

    @pl.when(pl.program_id(1) == pl.num_programs(1) - 1)
    def _():
        oq_ref[...] = (accq_ref[...] + bq_ref[...]).astype(oq_ref.dtype)
        ok_ref[...] = (acck_ref[...] + bk_ref[...]).astype(ok_ref.dtype)
        ov_ref[...] = (accv_ref[...] + bv_ref[...]).astype(ov_ref.dtype)


def qkv_projection_pallas(x, prep, *, block_m=512, block_k=512):
    """x: (M, D_in) f32.  Returns (qp, kp, vp) bf16 with widths H*d_k/H*d_k/H*d_v."""
    M, K = x.shape
    nq = prep["wt_q"].shape[1]
    nk = prep["wt_k"].shape[1]
    nv = prep["wt_v"].shape[1]
    bm = _pick_tile(M, block_m, 8)
    bk = _pick_tile(K, block_k, 128)
    vlim = _vmem_limit_bytes()
    return pl.pallas_call(
        _qkv_proj_kernel,
        out_shape=(jax.ShapeDtypeStruct((M, nq), jnp.bfloat16),
                   jax.ShapeDtypeStruct((M, nk), jnp.bfloat16),
                   jax.ShapeDtypeStruct((M, nv), jnp.bfloat16)),
        grid=(M // bm, K // bk),
        in_specs=[
            pl.BlockSpec((bm, bk), lambda i, k: (i, k)),
            pl.BlockSpec((bk, nq), lambda i, k: (k, 0)),
            pl.BlockSpec((bk, nk), lambda i, k: (k, 0)),
            pl.BlockSpec((bk, nv), lambda i, k: (k, 0)),
            pl.BlockSpec((1, nq), lambda i, k: (0, 0)),
            pl.BlockSpec((1, nk), lambda i, k: (0, 0)),
            pl.BlockSpec((1, nv), lambda i, k: (0, 0)),
        ],
        out_specs=(pl.BlockSpec((bm, nq), lambda i, k: (i, 0)),
                   pl.BlockSpec((bm, nk), lambda i, k: (i, 0)),
                   pl.BlockSpec((bm, nv), lambda i, k: (i, 0))),
        scratch_shapes=[pltpu.VMEM((bm, nq), jnp.float32),
                        pltpu.VMEM((bm, nk), jnp.float32),
                        pltpu.VMEM((bm, nv), jnp.float32)],
        compiler_params=pltpu.CompilerParams(
            dimension_semantics=("parallel", "arbitrary"),
            vmem_limit_bytes=vlim),
    )(x, prep["wt_q"], prep["wt_k"], prep["wt_v"],
      prep["b_q"].reshape(1, nq), prep["b_k"].reshape(1, nk),
      prep["b_v"].reshape(1, nv))


# ----------------------------------------------------------------------------
# Kernel 3: flash-style scaled dot-product attention.
# Grid = (batch tiles [parallel], KV tiles [arbitrary]).  Heads stay packed on
# the lane axis; m/l/acc live in f32 VMEM scratch across KV steps; scratch and
# the final output are written with single lane-dense stores.
# ----------------------------------------------------------------------------
def _flash_kernel(q_ref, k_ref, v_ref, o_ref, m_sc, l_sc, acc_sc,
                  *, n_head, d_k, d_v):
    kv_step = pl.program_id(1)

    @pl.when(kv_step == 0)
    def _init():
        m_sc[...] = jnp.full(m_sc.shape, -jnp.inf, jnp.float32)
        l_sc[...] = jnp.zeros(l_sc.shape, jnp.float32)
        acc_sc[...] = jnp.zeros(acc_sc.shape, jnp.float32)

    q = q_ref[...]            # (bb, Lq, H*d_k) bf16, pre-scaled by 1/sqrt(d_k)
    k = k_ref[...]            # (bb, tk, H*d_k) bf16
    v = v_ref[...]            # (bb, tk, H*d_v) bf16

    m_prev = m_sc[...]        # (bb, Lq, H) f32
    l_prev = l_sc[...]        # (bb, Lq, H) f32
    acc_prev = acc_sc[...]    # (bb, Lq, H*d_v) f32

    new_m, new_l, new_acc = [], [], []
    for h in range(n_head):                               # static unroll (small H)
        qh = q[:, :, h * d_k:(h + 1) * d_k]
        kh = k[:, :, h * d_k:(h + 1) * d_k]
        vh = v[:, :, h * d_v:(h + 1) * d_v]
        # q @ k^T without an explicit transpose: contract last dims, batch dim 0.
        s = lax.dot_general(qh, kh, (((2,), (2,)), ((0,), (0,))),
                            preferred_element_type=jnp.float32)    # (bb, Lq, tk) f32
        m_ph = m_prev[:, :, h:h + 1]
        m_nh = jnp.maximum(m_ph, jnp.max(s, axis=-1, keepdims=True))
        alpha = jnp.exp(m_ph - m_nh)                                # f32 elementwise
        p = jnp.exp(s - m_nh)                                       # f32
        new_l.append(alpha * l_prev[:, :, h:h + 1] + jnp.sum(p, axis=-1, keepdims=True))
        pv = lax.dot_general(p.astype(v.dtype), vh,
                             (((2,), (1,)), ((0,), (0,))),
                             preferred_element_type=jnp.float32)    # (bb, Lq, d_v)
        new_acc.append(alpha * acc_prev[:, :, h * d_v:(h + 1) * d_v] + pv)
        new_m.append(m_nh)

    # Single lane-dense store per state array (instead of H masked sub-stores).
    m_sc[...] = jnp.concatenate(new_m, axis=-1)
    l_sc[...] = jnp.concatenate(new_l, axis=-1)
    acc_sc[...] = jnp.concatenate(new_acc, axis=-1)

    @pl.when(kv_step == pl.num_programs(1) - 1)
    def _finalize():
        acc = acc_sc[...]
        # Approximate reciprocal (EUP slot): rows sum to ~1, not exactly 1.
        inv_l = pl.reciprocal(l_sc[...], approx=True)               # (bb, Lq, H)
        outs = [acc[:, :, h * d_v:(h + 1) * d_v] * inv_l[:, :, h:h + 1]
                for h in range(n_head)]
        # One full-width lane-dense store of the (bb, Lq, H*d_v) output block.
        o_ref[...] = jnp.concatenate(outs, axis=-1).astype(o_ref.dtype)


def _pick_block_b(B, Lq, tk, w_qk, w_v, n_head, budget):
    """Batch tile sized from the VMEM budget (bf16-aware), with >=2 grid steps
    whenever B >= 2 so both v7x TensorCores get work and the pipeline overlaps."""
    per_item = (2 * 2 * Lq * w_qk           # q block (bf16), double-buffered
                + 2 * 2 * tk * w_qk         # k block
                + 2 * 2 * tk * w_v          # v block
                + 2 * 4 * Lq * w_v          # out block (f32), double-buffered
                + 4 * Lq * (2 * n_head + w_v)   # m/l/acc scratch (f32)
                + 3 * 4 * Lq * tk)          # live score/prob temporaries (f32)
    bb = max(1, min(B, budget // max(per_item, 1)))
    while B % bb:
        bb -= 1
    if B >= 2:
        bb = min(bb, B // 2)
        while B % bb:
            bb -= 1
    return max(bb, 1)


def flash_attention_pallas(qp, kp, vp, n_head, d_k, d_v):
    """qp: (B, Lq, H*d_k), kp: (B, Lk, H*d_k), vp: (B, Lk, H*d_v) bf16
    (q pre-scaled by 1/sqrt(d_k)) -> (B, Lq, H*d_v) f32."""
    B, Lq, w_qk = qp.shape
    _, Lk, _ = kp.shape
    w_v = vp.shape[-1]
    vlim = _vmem_limit_bytes()
    tk = _pick_tile(Lk, 512, 8)
    bb = _pick_block_b(B, Lq, tk, w_qk, w_v, n_head, budget=vlim // 2)
    kernel = functools.partial(_flash_kernel, n_head=n_head, d_k=d_k, d_v=d_v)
    return pl.pallas_call(
        kernel,
        out_shape=jax.ShapeDtypeStruct((B, Lq, n_head * d_v), jnp.float32),
        grid=(B // bb, Lk // tk),
        in_specs=[
            pl.BlockSpec((bb, Lq, w_qk), lambda i, j: (i, 0, 0)),
            pl.BlockSpec((bb, tk, w_qk), lambda i, j: (i, j, 0)),
            pl.BlockSpec((bb, tk, w_v), lambda i, j: (i, j, 0)),
        ],
        out_specs=pl.BlockSpec((bb, Lq, n_head * d_v), lambda i, j: (i, 0, 0)),
        scratch_shapes=[pltpu.VMEM((bb, Lq, n_head), jnp.float32),        # m
                        pltpu.VMEM((bb, Lq, n_head), jnp.float32),        # l
                        pltpu.VMEM((bb, Lq, n_head * d_v), jnp.float32)], # acc
        compiler_params=pltpu.CompilerParams(
            dimension_semantics=("parallel", "arbitrary"),
            vmem_limit_bytes=vlim),
    )(qp, kp, vp)


# ----------------------------------------------------------------------------
# MultiHeadAttention forward
# ----------------------------------------------------------------------------
def multi_head_attention(prep, q, k, v, n_head, d_k, d_v, *, fuse_qkv=False):
    """Forward pass of the MultiHeadAttention module (mask=None path).

    prep: params prepared by prepare_params (weights transposed, bf16, Wq/bq
    pre-scaled by 1/sqrt(d_k)).
    q, k, v: (batch, len, d_model) f32.
    fuse_qkv=True assumes q, k and v are the SAME tensor (self-attention);
    the projection kernel then reads x once per block and emits Q/K/V from a
    single launch.  (This is not verified at runtime.)
    """
    B, Lq, d_model = q.shape
    if fuse_qkv:
        qp, kp, vp = qkv_projection_pallas(q.reshape(B * Lq, d_model), prep)
        Lk = Lq
    else:
        Lk = k.shape[1]
        Lv = v.shape[1]
        qp = linear_pallas(q.reshape(B * Lq, d_model), prep["wt_q"], prep["b_q"])
        kp = linear_pallas(k.reshape(B * Lk, d_model), prep["wt_k"], prep["b_k"])
        vp = linear_pallas(v.reshape(B * Lv, d_model), prep["wt_v"], prep["b_v"])
    # (B*L, H*d) -> (B, L, H*d) is free; heads stay packed on the lane axis and
    # are split inside the attention kernel (no HBM transposes).
    return flash_attention_pallas(qp.reshape(B, Lq, -1), kp.reshape(B, Lk, -1),
                                  vp.reshape(B, Lk, -1), n_head, d_k, d_v)


def init_params(key, n_head, d_model, d_k, d_v):
    """nn.Linear-style init, weights in PyTorch (d_out, d_in) layout, f32."""
    ks = jax.random.split(key, 6)
    bound = 1.0 / math.sqrt(d_model)

    def u(kk, shape):
        return jax.random.uniform(kk, shape, jnp.float32, -bound, bound)

    return {
        "w_q": u(ks[0], (n_head * d_k, d_model)), "b_q": u(ks[1], (n_head * d_k,)),
        "w_k": u(ks[2], (n_head * d_k, d_model)), "b_k": u(ks[3], (n_head * d_k,)),
        "w_v": u(ks[4], (n_head * d_v, d_model)), "b_v": u(ks[5], (n_head * d_v,)),
    }


def prepare_params(params, d_k):
    """One-time weight prep: transpose to (d_in, d_out), cast weights to bf16
    (MXU operand dtype, halves HBM/VMEM), keep biases f32 (added to the f32
    accumulator), and fold 1/sqrt(d_k) into the query projection."""
    scale = 1.0 / math.sqrt(d_k)
    return {
        "wt_q": (params["w_q"].T * scale).astype(jnp.bfloat16),
        "b_q": (params["b_q"] * scale).astype(jnp.float32),
        "wt_k": params["w_k"].T.astype(jnp.bfloat16),
        "b_k": params["b_k"].astype(jnp.float32),
        "wt_v": params["w_v"].T.astype(jnp.bfloat16),
        "b_v": params["b_v"].astype(jnp.float32),
    }


def reference_mha(params, q, k, v, n_head, d_k, d_v):
    """Pure-JAX f32 reference mirroring the PyTorch module, for sanity checking."""
    B, Lq, _ = q.shape
    Lk = k.shape[1]
    qp = q @ params["w_q"].T + params["b_q"]
    kp = k @ params["w_k"].T + params["b_k"]
    vp = v @ params["w_v"].T + params["b_v"]
    qh = qp.reshape(B, Lq, n_head, d_k).transpose(2, 0, 1, 3).reshape(-1, Lq, d_k)
    kh = kp.reshape(B, Lk, n_head, d_k).transpose(2, 0, 1, 3).reshape(-1, Lk, d_k)
    vh = vp.reshape(B, Lk, n_head, d_v).transpose(2, 0, 1, 3).reshape(-1, Lk, d_v)
    attn = jnp.einsum("bqd,bkd->bqk", qh, kh) / math.sqrt(d_k)
    attn = jax.nn.softmax(attn, axis=-1)
    out = jnp.einsum("bqk,bkd->bqd", attn, vh)
    return out.reshape(n_head, B, Lq, d_v).transpose(1, 2, 0, 3).reshape(B, Lq, n_head * d_v)


if __name__ == "__main__":
    n_head, d_model, d_k, d_v = 4, 32, 8, 8
    B, L = 2, 8

    key = jax.random.PRNGKey(0)
    kq, kk, kv, kp = jax.random.split(key, 4)
    q = jax.random.normal(kq, (B, L, d_model), jnp.float32)
    k = jax.random.normal(kk, (B, L, d_model), jnp.float32)
    v = jax.random.normal(kv, (B, L, d_model), jnp.float32)
    params = init_params(kp, n_head, d_model, d_k, d_v)
    prep = prepare_params(params, d_k)

    # Cross-attention path: distinct q/k/v, tiled bf16 projection kernels.
    fwd = jax.jit(functools.partial(multi_head_attention,
                                    n_head=n_head, d_k=d_k, d_v=d_v))
    out = jax.block_until_ready(fwd(prep, q, k, v))
    ref = reference_mha(params, q, k, v, n_head, d_k, d_v)
    assert out.shape == (B, L, n_head * d_v)
    assert jnp.allclose(out, ref, atol=2e-2, rtol=2e-2), \
        float(jnp.max(jnp.abs(out - ref)))

    # Self-attention path: one projection kernel emitting Q/K/V (x read once).
    fwd_self = jax.jit(functools.partial(multi_head_attention,
                                         n_head=n_head, d_k=d_k, d_v=d_v,
                                         fuse_qkv=True))
    out_self = jax.block_until_ready(fwd_self(prep, q, q, q))
    ref_self = reference_mha(params, q, q, q, n_head, d_k, d_v)
    assert out_self.shape == (B, L, n_head * d_v)
    assert jnp.allclose(out_self, ref_self, atol=2e-2, rtol=2e-2), \
        float(jnp.max(jnp.abs(out_self - ref_self)))

    print("KERNEL_OK")
</pallas_src>

<mosaic_0001>
module attributes {stable_mosaic.version = 11 : i64} {
  func.func @_linear_kernel(%arg0: i32, %arg1: i32, %arg2: i32, %arg3: memref<16x32xf32, #tpu.memory_space<vmem>>, %arg4: memref<32x32xbf16, #tpu.memory_space<vmem>>, %arg5: memref<1x32xf32, #tpu.memory_space<vmem>>, %arg6: memref<16x32xbf16, #tpu.memory_space<vmem>>, %arg7: memref<16x32xf32, #tpu.memory_space<vmem>>) attributes {dimension_semantics = [#tpu.dimension_semantics<parallel>, #tpu.dimension_semantics<parallel>, #tpu.dimension_semantics<arbitrary>], iteration_bounds = array<i64: 1, 1, 1>, scalar_prefetch = 0 : i64, scratch_operands = 1 : i64, tpu.core_type = #tpu.core_type<tc>, window_params = [{transform_indices = @transform_0, window_bounds = array<i64: 16, 32>}, {transform_indices = @transform_1, window_bounds = array<i64: 32, 32>}, {transform_indices = @transform_2, window_bounds = array<i64: 1, 32>}, {transform_indices = @transform_3, window_bounds = array<i64: 16, 32>}]} {
    %c0_i32 = arith.constant 0 : i32
    %0 = arith.cmpi eq, %arg2, %c0_i32 : i32
    %1 = arith.extui %0 : i1 to i32
    %c0_i32_0 = arith.constant 0 : i32
    %2 = arith.cmpi ne, %1, %c0_i32_0 : i32
    scf.if %2 {
      %cst_10 = arith.constant 0.000000e+00 : f32
      %13 = vector.broadcast %cst_10 : f32 to vector<16x32xf32>
      %c0_11 = arith.constant 0 : index
      %c0_12 = arith.constant 0 : index
      %14 = vector.load %arg7[%c0_11, %c0_12] : memref<16x32xf32, #tpu.memory_space<vmem>>, vector<16x32xf32>
      tpu.vector_store %arg7[%c0_11, %c0_12], %13 {strides = array<i32>} : memref<16x32xf32, #tpu.memory_space<vmem>>, vector<16x32xf32>,
    } else {
    }
    %c0 = arith.constant 0 : index
    %c0_1 = arith.constant 0 : index
    %3 = vector.load %arg7[%c0, %c0_1] : memref<16x32xf32, #tpu.memory_space<vmem>>, vector<16x32xf32>
    %c0_2 = arith.constant 0 : index
    %c0_3 = arith.constant 0 : index
    %4 = vector.load %arg3[%c0_2, %c0_3] : memref<16x32xf32, #tpu.memory_space<vmem>>, vector<16x32xf32>
    %5 = arith.truncf %4 : vector<16x32xf32> to vector<16x32xbf16>
    %c0_4 = arith.constant 0 : index
    %c0_5 = arith.constant 0 : index
    %6 = vector.load %arg4[%c0_4, %c0_5] : memref<32x32xbf16, #tpu.memory_space<vmem>>, vector<32x32xbf16>
    %cst = arith.constant dense<0.000000e+00> : vector<16x32xf32>
    %7 = tpu.matmul %5, %6, %cst {dimension_numbers = #tpu.dot_dimension_numbers<[1], [0], [0], [1], [0, 0, 1, 1], [], []>} : vector<16x32xbf16>, vector<32x32xbf16>, vector<16x32xf32> -> vector<16x32xf32>
    %8 = arith.addf %3, %7 : vector<16x32xf32>
    %c0_6 = arith.constant 0 : index
    %c0_7 = arith.constant 0 : index
    %9 = vector.load %arg7[%c0_6, %c0_7] : memref<16x32xf32, #tpu.memory_space<vmem>>, vector<16x32xf32>
    tpu.vector_store %arg7[%c0_6, %c0_7], %8 {strides = array<i32>} : memref<16x32xf32, #tpu.memory_space<vmem>>, vector<16x32xf32>,
    %c0_i32_8 = arith.constant 0 : i32
    %10 = arith.cmpi eq, %arg2, %c0_i32_8 : i32
    %11 = arith.extui %10 : i1 to i32
    %c0_i32_9 = arith.constant 0 : i32
    %12 = arith.cmpi ne, %11, %c0_i32_9 : i32
    scf.if %12 {
      %c0_10 = arith.constant 0 : index
      %c0_11 = arith.constant 0 : index
      %13 = vector.load %arg7[%c0_10, %c0_11] : memref<16x32xf32, #tpu.memory_space<vmem>>, vector<16x32xf32>
      %c0_12 = arith.constant 0 : index
      %c0_13 = arith.constant 0 : index
      %14 = vector.load %arg5[%c0_12, %c0_13] : memref<1x32xf32, #tpu.memory_space<vmem>>, vector<1x32xf32>
      %15 = vector.broadcast %14 : vector<1x32xf32> to vector<16x32xf32>
      %16 = arith.addf %13, %15 : vector<16x32xf32>
      %17 = arith.truncf %16 : vector<16x32xf32> to vector<16x32xbf16>
      %c0_14 = arith.constant 0 : index
      %c0_15 = arith.constant 0 : index
      %18 = vector.load %arg6[%c0_14, %c0_15] : memref<16x32xbf16, #tpu.memory_space<vmem>>, vector<16x32xbf16>
      tpu.vector_store %arg6[%c0_14, %c0_15], %17 {strides = array<i32>} : memref<16x32xbf16, #tpu.memory_space<vmem>>, vector<16x32xbf16>,
    } else {
    }
    return
  }
  func.func @transform_0(%arg0: i32, %arg1: i32, %arg2: i32) -> (i32, i32) {
    %c0_i32 = arith.constant 0 : i32
    return %arg0, %arg2 : i32, i32
  }
  func.func @transform_1(%arg0: i32, %arg1: i32, %arg2: i32) -> (i32, i32) {
    %c0_i32 = arith.constant 0 : i32
    return %arg2, %arg1 : i32, i32
  }
  func.func @transform_2(%arg0: i32, %arg1: i32, %arg2: i32) -> (i32, i32) {
    %c0_i32 = arith.constant 0 : i32
    %c0_i32_0 = arith.constant 0 : i32
    return %c0_i32, %arg1 : i32, i32
  }
  func.func @transform_3(%arg0: i32, %arg1: i32, %arg2: i32) -> (i32, i32) {
    %c0_i32 = arith.constant 0 : i32
    return %arg0, %arg1 : i32, i32
  }
}

module attributes {stable_mosaic.version = 11 : i64} {
  func.func @_linear_kernel(%arg0: i32, %arg1: i32, %arg2: i32, %arg3: memref<16x32xf32, #tpu.memory_space<vmem>>, %arg4: memref<32x32xbf16, #tpu.memory_space<vmem>>, %arg5: memref<1x32xf32, #tpu.memory_space<vmem>>, %arg6: memref<16x32xbf16, #tpu.memory_space<vmem>>, %arg7: memref<16x32xf32, #tpu.memory_space<vmem>>) attributes {dimension_semantics = [#tpu.dimension_semantics<parallel>, #tpu.dimension_semantics<parallel>, #tpu.dimension_semantics<arbitrary>], iteration_bounds = array<i64: 1, 1, 1>, scalar_prefetch = 0 : i64, scratch_operands = 1 : i64, tpu.core_type = #tpu.core_type<tc>, window_params = [{transform_indices = @transform_0, window_bounds = array<i64: 16, 32>}, {transform_indices = @transform_1, window_bounds = array<i64: 32, 32>}, {transform_indices = @transform_2, window_bounds = array<i64: 1, 32>}, {transform_indices = @transform_3, window_bounds = array<i64: 16, 32>}]} {
    %c0_i32 = arith.constant 0 : i32
    %0 = arith.cmpi eq, %arg2, %c0_i32 : i32
    %1 = arith.extui %0 : i1 to i32
    %c0_i32_0 = arith.constant 0 : i32
    %2 = arith.cmpi ne, %1, %c0_i32_0 : i32
    scf.if %2 {
      %cst_10 = arith.constant 0.000000e+00 : f32
      %13 = vector.broadcast %cst_10 : f32 to vector<16x32xf32>
      %c0_11 = arith.constant 0 : index
      %c0_12 = arith.constant 0 : index
      %14 = vector.load %arg7[%c0_11, %c0_12] : memref<16x32xf32, #tpu.memory_space<vmem>>, vector<16x32xf32>
      tpu.vector_store %arg7[%c0_11, %c0_12], %13 {strides = array<i32>} : memref<16x32xf32, #tpu.memory_space<vmem>>, vector<16x32xf32>,
    } else {
    }
    %c0 = arith.constant 0 : index
    %c0_1 = arith.constant 0 : index
    %3 = vector.load %arg7[%c0, %c0_1] : memref<16x32xf32, #tpu.memory_space<vmem>>, vector<16x32xf32>
    %c0_2 = arith.constant 0 : index
    %c0_3 = arith.constant 0 : index
    %4 = vector.load %arg3[%c0_2, %c0_3] : memref<16x32xf32, #tpu.memory_space<vmem>>, vector<16x32xf32>
    %5 = arith.truncf %4 : vector<16x32xf32> to vector<16x32xbf16>
    %c0_4 = arith.constant 0 : index
    %c0_5 = arith.constant 0 : index
    %6 = vector.load %arg4[%c0_4, %c0_5] : memref<32x32xbf16, #tpu.memory_space<vmem>>, vector<32x32xbf16>
    %cst = arith.constant dense<0.000000e+00> : vector<16x32xf32>
    %7 = tpu.matmul %5, %6, %cst {dimension_numbers = #tpu.dot_dimension_numbers<[1], [0], [0], [1], [0, 0, 1, 1], [], []>} : vector<16x32xbf16>, vector<32x32xbf16>, vector<16x32xf32> -> vector<16x32xf32>
    %8 = arith.addf %3, %7 : vector<16x32xf32>
    %c0_6 = arith.constant 0 : index
    %c0_7 = arith.constant 0 : index
    %9 = vector.load %arg7[%c0_6, %c0_7] : memref<16x32xf32, #tpu.memory_space<vmem>>, vector<16x32xf32>
    tpu.vector_store %arg7[%c0_6, %c0_7], %8 {strides = array<i32>} : memref<16x32xf32, #tpu.memory_space<vmem>>, vector<16x32xf32>,
    %c0_i32_8 = arith.constant 0 : i32
    %10 = arith.cmpi eq, %arg2, %c0_i32_8 : i32
    %11 = arith.extui %10 : i1 to i32
    %c0_i32_9 = arith.constant 0 : i32
    %12 = arith.cmpi ne, %11, %c0_i32_9 : i32
    scf.if %12 {
      %c0_10 = arith.constant 0 : index
      %c0_11 = arith.constant 0 : index
      %13 = vector.load %arg7[%c0_10, %c0_11] : memref<16x32xf32, #tpu.memory_space<vmem>>, vector<16x32xf32>
      %c0_12 = arith.constant 0 : index
      %c0_13 = arith.constant 0 : index
      %14 = vector.load %arg5[%c0_12, %c0_13] : memref<1x32xf32, #tpu.memory_space<vmem>>, vector<1x32xf32>
      %15 = vector.broadcast %14 : vector<1x32xf32> to vector<16x32xf32>
      %16 = arith.addf %13, %15 : vector<16x32xf32>
      %17 = arith.truncf %16 : vector<16x32xf32> to vector<16x32xbf16>
      %c0_14 = arith.constant 0 : index
      %c0_15 = arith.constant 0 : index
      %18 = vector.load %arg6[%c0_14, %c0_15] : memref<16x32xbf16, #tpu.memory_space<vmem>>, vector<16x32xbf16>
      tpu.vector_store %arg6[%c0_14, %c0_15], %17 {strides = array<i32>} : memref<16x32xbf16, #tpu.memory_space<vmem>>, vector<16x32xbf16>,
    } else {
    }
    return
  }
  func.func @transform_0(%arg0: i32, %arg1: i32, %arg2: i32) -> (i32, i32) {
    %c0_i32 = arith.constant 0 : i32
    return %arg0, %arg2 : i32, i32
  }
  func.func @transform_1(%arg0: i32, %arg1: i32, %arg2: i32) -> (i32, i32) {
    %c0_i32 = arith.constant 0 : i32
    return %arg2, %arg1 : i32, i32
  }
  func.func @transform_2(%arg0: i32, %arg1: i32, %arg2: i32) -> (i32, i32) {
    %c0_i32 = arith.constant 0 : i32
    %c0_i32_0 = arith.constant 0 : i32
    return %c0_i32, %arg1 : i32, i32
  }
  func.func @transform_3(%arg0: i32, %arg1: i32, %arg2: i32) -> (i32, i32) {
    %c0_i32 = arith.constant 0 : i32
    return %arg0, %arg1 : i32, i32
  }
}

module attributes {stable_mosaic.version = 11 : i64} {
  func.func @_flash_kernel(%arg0: i32, %arg1: i32, %arg2: memref<1x8x32xbf16, #tpu.memory_space<vmem>>, %arg3: memref<1x8x32xbf16, #tpu.memory_space<vmem>>, %arg4: memref<1x8x32xbf16, #tpu.memory_space<vmem>>, %arg5: memref<1x8x32xf32, #tpu.memory_space<vmem>>, %arg6: memref<1x8x4xf32, #tpu.memory_space<vmem>>, %arg7: memref<1x8x4xf32, #tpu.memory_space<vmem>>, %arg8: memref<1x8x32xf32, #tpu.memory_space<vmem>>) attributes {dimension_semantics = [#tpu.dimension_semantics<parallel>, #tpu.dimension_semantics<arbitrary>], iteration_bounds = array<i64: 2, 1>, scalar_prefetch = 0 : i64, scratch_operands = 3 : i64, tpu.core_type = #tpu.core_type<tc>, window_params = [{transform_indices = @transform_0, window_bounds = array<i64: 1, 8, 32>}, {transform_indices = @transform_1, window_bounds = array<i64: 1, 8, 32>}, {transform_indices = @transform_2, window_bounds = array<i64: 1, 8, 32>}, {transform_indices = @transform_3, window_bounds = array<i64: 1, 8, 32>}]} {
    %c0_i32 = arith.constant 0 : i32
    %0 = arith.cmpi eq, %arg1, %c0_i32 : i32
    %1 = arith.extui %0 : i1 to i32
    %c0_i32_0 = arith.constant 0 : i32
    %2 = arith.cmpi ne, %1, %c0_i32_0 : i32
    scf.if %2 {
      %cst_44 = arith.constant 0xFF800000 : f32
      %114 = vector.broadcast %cst_44 : f32 to vector<1x8x4xf32>
      %c0_45 = arith.constant 0 : index
      %c0_46 = arith.constant 0 : index
      %c0_47 = arith.constant 0 : index
      %115 = vector.load %arg6[%c0_45, %c0_46, %c0_47] : memref<1x8x4xf32, #tpu.memory_space<vmem>>, vector<1x8x4xf32>
      tpu.vector_store %arg6[%c0_45, %c0_46, %c0_47], %114 {strides = array<i32>} : memref<1x8x4xf32, #tpu.memory_space<vmem>>, vector<1x8x4xf32>,
      %cst_48 = arith.constant 0.000000e+00 : f32
      %116 = vector.broadcast %cst_48 : f32 to vector<1x8x4xf32>
      %c0_49 = arith.constant 0 : index
      %c0_50 = arith.constant 0 : index
      %c0_51 = arith.constant 0 : index
      %117 = vector.load %arg7[%c0_49, %c0_50, %c0_51] : memref<1x8x4xf32, #tpu.memory_space<vmem>>, vector<1x8x4xf32>
      tpu.vector_store %arg7[%c0_49, %c0_50, %c0_51], %116 {strides = array<i32>} : memref<1x8x4xf32, #tpu.memory_space<vmem>>, vector<1x8x4xf32>,
      %cst_52 = arith.constant 0.000000e+00 : f32
      %118 = vector.broadcast %cst_52 : f32 to vector<1x8x32xf32>
      %c0_53 = arith.constant 0 : index
      %c0_54 = arith.constant 0 : index
      %c0_55 = arith.constant 0 : index
      %119 = vector.load %arg8[%c0_53, %c0_54, %c0_55] : memref<1x8x32xf32, #tpu.memory_space<vmem>>, vector<1x8x32xf32>
      tpu.vector_store %arg8[%c0_53, %c0_54, %c0_55], %118 {strides = array<i32>} : memref<1x8x32xf32, #tpu.memory_space<vmem>>, vector<1x8x32xf32>,
    } else {
    }
    %c0 = arith.constant 0 : index
    %c0_1 = arith.constant 0 : index
    %c0_2 = arith.constant 0 : index
    %3 = vector.load %arg2[%c0, %c0_1, %c0_2] : memref<1x8x32xbf16, #tpu.memory_space<vmem>>, vector<1x8x32xbf16>
    %c0_3 = arith.constant 0 : index
    %c0_4 = arith.constant 0 : index
    %c0_5 = arith.constant 0 : index
    %4 = vector.load %arg3[%c0_3, %c0_4, %c0_5] : memref<1x8x32xbf16, #tpu.memory_space<vmem>>, vector<1x8x32xbf16>
    %c0_6 = arith.constant 0 : index
    %c0_7 = arith.constant 0 : index
    %c0_8 = arith.constant 0 : index
    %5 = vector.load %arg4[%c0_6, %c0_7, %c0_8] : memref<1x8x32xbf16, #tpu.memory_space<vmem>>, vector<1x8x32xbf16>
    %c0_9 = arith.constant 0 : index
    %c0_10 = arith.constant 0 : index
    %c0_11 = arith.constant 0 : index
    %6 = vector.load %arg6[%c0_9, %c0_10, %c0_11] : memref<1x8x4xf32, #tpu.memory_space<vmem>>, vector<1x8x4xf32>
    %c0_12 = arith.constant 0 : index
    %c0_13 = arith.constant 0 : index
    %c0_14 = arith.constant 0 : index
    %7 = vector.load %arg7[%c0_12, %c0_13, %c0_14] : memref<1x8x4xf32, #tpu.memory_space<vmem>>, vector<1x8x4xf32>
    %c0_15 = arith.constant 0 : index
    %c0_16 = arith.constant 0 : index
    %c0_17 = arith.constant 0 : index
    %8 = vector.load %arg8[%c0_15, %c0_16, %c0_17] : memref<1x8x32xf32, #tpu.memory_space<vmem>>, vector<1x8x32xf32>
    %9 = vector.extract_strided_slice %3 {offsets = [0, 0, 0], sizes = [1, 8, 8], strides = [1, 1, 1]} : vector<1x8x32xbf16> to vector<1x8x8xbf16>
    %10 = vector.extract_strided_slice %4 {offsets = [0, 0, 0], sizes = [1, 8, 8], strides = [1, 1, 1]} : vector<1x8x32xbf16> to vector<1x8x8xbf16>
    %11 = vector.extract_strided_slice %5 {offsets = [0, 0, 0], sizes = [1, 8, 8], strides = [1, 1, 1]} : vector<1x8x32xbf16> to vector<1x8x8xbf16>
    %cst = arith.constant dense<0.000000e+00> : vector<1x8x8xf32>
    %12 = tpu.matmul %9, %10, %cst {dimension_numbers = #tpu.dot_dimension_numbers<[2], [2], [1], [1], [0, 0, 0, 1, 1, 1], [0], [0]>} : vector<1x8x8xbf16>, vector<1x8x8xbf16>, vector<1x8x8xf32> -> vector<1x8x8xf32>
    %13 = vector.extract_strided_slice %6 {offsets = [0, 0, 0], sizes = [1, 8, 1], strides = [1, 1, 1]} : vector<1x8x4xf32> to vector<1x8x1xf32>
    %cst_18 = arith.constant dense<0xFF800000> : vector<1x8xf32>
    %14 = vector.multi_reduction <maximumf>, %12, %cst_18 [2] : vector<1x8x8xf32> to vector<1x8xf32>
    %15 = vector.shape_cast %14 : vector<1x8xf32> to vector<1x8x1xf32>
    %16 = arith.maximumf %13, %15 : vector<1x8x1xf32>
    %17 = arith.subf %13, %16 : vector<1x8x1xf32>
    %18 = math.exp %17 : vector<1x8x1xf32>
    %19 = vector.broadcast %16 : vector<1x8x1xf32> to vector<1x8x8xf32>
    %20 = arith.subf %12, %19 : vector<1x8x8xf32>
    %21 = math.exp %20 : vector<1x8x8xf32>
    %22 = vector.extract_strided_slice %7 {offsets = [0, 0, 0], sizes = [1, 8, 1], strides = [1, 1, 1]} : vector<1x8x4xf32> to vector<1x8x1xf32>
    %23 = arith.mulf %18, %22 : vector<1x8x1xf32>
    %cst_19 = arith.constant dense<0.000000e+00> : vector<1x8xf32>
    %24 = vector.multi_reduction <add>, %21, %cst_19 [2] : vector<1x8x8xf32> to vector<1x8xf32>
    %25 = vector.shape_cast %24 : vector<1x8xf32> to vector<1x8x1xf32>
    %26 = arith.addf %23, %25 : vector<1x8x1xf32>
    %27 = arith.truncf %21 : vector<1x8x8xf32> to vector<1x8x8xbf16>
    %cst_20 = arith.constant dense<0.000000e+00> : vector<1x8x8xf32>
    %28 = tpu.matmul %27, %11, %cst_20 {dimension_numbers = #tpu.dot_dimension_numbers<[2], [1], [1], [2], [0, 0, 0, 1, 1, 2], [0], [0]>} : vector<1x8x8xbf16>, vector<1x8x8xbf16>, vector<1x8x8xf32> -> vector<1x8x8xf32>
    %29 = vector.extract_strided_slice %8 {offsets = [0, 0, 0], sizes = [1, 8, 8], strides = [1, 1, 1]} : vector<1x8x32xf32> to vector<1x8x8xf32>
    %30 = vector.broadcast %18 : vector<1x8x1xf32> to vector<1x8x8xf32>
    %31 = arith.mulf %30, %29 : vector<1x8x8xf32>
    %32 = arith.addf %31, %28 : vector<1x8x8xf32>
    %33 = vector.extract_strided_slice %3 {offsets = [0, 0, 8], sizes = [1, 8, 8], strides = [1, 1, 1]} : vector<1x8x32xbf16> to vector<1x8x8xbf16>
    %34 = vector.extract_strided_slice %4 {offsets = [0, 0, 8], sizes = [1, 8, 8], strides = [1, 1, 1]} : vector<1x8x32xbf16> to vector<1x8x8xbf16>
    %35 = vector.extract_strided_slice %5 {offsets = [0, 0, 8], sizes = [1, 8, 8], strides = [1, 1, 1]} : vector<1x8x32xbf16> to vector<1x8x8xbf16>
    %cst_21 = arith.constant dense<0.000000e+00> : vector<1x8x8xf32>
    %36 = tpu.matmul %33, %34, %cst_21 {dimension_numbers = #tpu.dot_dimension_numbers<[2], [2], [1], [1], [0, 0, 0, 1, 1, 1], [0], [0]>} : vector<1x8x8xbf16>, vector<1x8x8xbf16>, vector<1x8x8xf32> -> vector<1x8x8xf32>
    %37 = vector.extract_strided_slice %6 {offsets = [0, 0, 1], sizes = [1, 8, 1], strides = [1, 1, 1]} : vector<1x8x4xf32> to vector<1x8x1xf32>
    %cst_22 = arith.constant dense<0xFF800000> : vector<1x8xf32>
    %38 = vector.multi_reduction <maximumf>, %36, %cst_22 [2] : vector<1x8x8xf32> to vector<1x8xf32>
    %39 = vector.shape_cast %38 : vector<1x8xf32> to vector<1x8x1xf32>
    %40 = arith.maximumf %37, %39 : vector<1x8x1xf32>
    %41 = arith.subf %37, %40 : vector<1x8x1xf32>
    %42 = math.exp %41 : vector<1x8x1xf32>
    %43 = vector.broadcast %40 : vector<1x8x1xf32> to vector<1x8x8xf32>
    %44 = arith.subf %36, %43 : vector<1x8x8xf32>
    %45 = math.exp %44 : vector<1x8x8xf32>
    %46 = vector.extract_strided_slice %7 {offsets = [0, 0, 1], sizes = [1, 8, 1], strides = [1, 1, 1]} : vector<1x8x4xf32> to vector<1x8x1xf32>
    %47 = arith.mulf %42, %46 : vector<1x8x1xf32>
    %cst_23 = arith.constant dense<0.000000e+00> : vector<1x8xf32>
    %48 = vector.multi_reduction <add>, %45, %cst_23 [2] : vector<1x8x8xf32> to vector<1x8xf32>
    %49 = vector.shape_cast %48 : vector<1x8xf32> to vector<1x8x1xf32>
    %50 = arith.addf %47, %49 : vector<1x8x1xf32>
    %51 = arith.truncf %45 : vector<1x8x8xf32> to vector<1x8x8xbf16>
    %cst_24 = arith.constant dense<0.000000e+00> : vector<1x8x8xf32>
    %52 = tpu.matmul %51, %35, %cst_24 {dimension_numbers = #tpu.dot_dimension_numbers<[2], [1], [1], [2], [0, 0, 0, 1, 1, 2], [0], [0]>} : vector<1x8x8xbf16>, vector<1x8x8xbf16>, vector<1x8x8xf32> -> vector<1x8x8xf32>
    %53 = vector.extract_strided_slice %8 {offsets = [0, 0, 8], sizes = [1, 8, 8], strides = [1, 1, 1]} : vector<1x8x32xf32> to vector<1x8x8xf32>
    %54 = vector.broadcast %42 : vector<1x8x1xf32> to vector<1x8x8xf32>
    %55 = arith.mulf %54, %53 : vector<1x8x8xf32>
    %56 = arith.addf %55, %52 : vector<1x8x8xf32>
    %57 = vector.extract_strided_slice %3 {offsets = [0, 0, 16], sizes = [1, 8, 8], strides = [1, 1, 1]} : vector<1x8x32xbf16> to vector<1x8x8xbf16>
    %58 = vector.extract_strided_slice %4 {offsets = [0, 0, 16], sizes = [1, 8, 8], strides = [1, 1, 1]} : vector<1x8x32xbf16> to vector<1x8x8xbf16>
    %59 = vector.extract_strided_slice %5 {offsets = [0, 0, 16], sizes = [1, 8, 8], strides = [1, 1, 1]} : vector<1x8x32xbf16> to vector<1x8x8xbf16>
    %cst_25 = arith.constant dense<0.000000e+00> : vector<1x8x8xf32>
    %60 = tpu.matmul %57, %58, %cst_25 {dimension_numbers = #tpu.dot_dimension_numbers<[2], [2], [1], [1], [0, 0, 0, 1, 1, 1], [0], [0]>} : vector<1x8x8xbf16>, vector<1x8x8xbf16>, vector<1x8x8xf32> -> vector<1x8x8xf32>
    %61 = vector.extract_strided_slice %6 {offsets = [0, 0, 2], sizes = [1, 8, 1], strides = [1, 1, 1]} : vector<1x8x4xf32> to vector<1x8x1xf32>
    %cst_26 = arith.constant dense<0xFF800000> : vector<1x8xf32>
    %62 = vector.multi_reduction <maximumf>, %60, %cst_26 [2] : vector<1x8x8xf32> to vector<1x8xf32>
    %63 = vector.shape_cast %62 : vector<1x8xf32> to vector<1x8x1xf32>
    %64 = arith.maximumf %61, %63 : vector<1x8x1xf32>
    %65 = arith.subf %61, %64 : vector<1x8x1xf32>
    %66 = math.exp %65 : vector<1x8x1xf32>
    %67 = vector.broadcast %64 : vector<1x8x1xf32> to vector<1x8x8xf32>
    %68 = arith.subf %60, %67 : vector<1x8x8xf32>
    %69 = math.exp %68 : vector<1x8x8xf32>
    %70 = vector.extract_strided_slice %7 {offsets = [0, 0, 2], sizes = [1, 8, 1], strides = [1, 1, 1]} : vector<1x8x4xf32> to vector<1x8x1xf32>
    %71 = arith.mulf %66, %70 : vector<1x8x1xf32>
    %cst_27 = arith.constant dense<0.000000e+00> : vector<1x8xf32>
    %72 = vector.multi_reduction <add>, %69, %cst_27 [2] : vector<1x8x8xf32> to vector<1x8xf32>
    %73 = vector.shape_cast %72 : vector<1x8xf32> to vector<1x8x1xf32>
    %74 = arith.addf %71, %73 : vector<1x8x1xf32>
    %75 = arith.truncf %69 : vector<1x8x8xf32> to vector<1x8x8xbf16>
    %cst_28 = arith.constant dense<0.000000e+00> : vector<1x8x8xf32>
    %76 = tpu.matmul %75, %59, %cst_28 {dimension_numbers = #tpu.dot_dimension_numbers<[2], [1], [1], [2], [0, 0, 0, 1, 1, 2], [0], [0]>} : vector<1x8x8xbf16>, vector<1x8x8xbf16>, vector<1x8x8xf32> -> vector<1x8x8xf32>
    %77 = vector.extract_strided_slice %8 {offsets = [0, 0, 16], sizes = [1, 8, 8], strides = [1, 1, 1]} : vector<1x8x32xf32> to vector<1x8x8xf32>
    %78 = vector.broadcast %66 : vector<1x8x1xf32> to vector<1x8x8xf32>
    %79 = arith.mulf %78, %77 : vector<1x8x8xf32>
    %80 = arith.addf %79, %76 : vector<1x8x8xf32>
    %81 = vector.extract_strided_slice %3 {offsets = [0, 0, 24], sizes = [1, 8, 8], strides = [1, 1, 1]} : vector<1x8x32xbf16> to vector<1x8x8xbf16>
    %82 = vector.extract_strided_slice %4 {offsets = [0, 0, 24], sizes = [1, 8, 8], strides = [1, 1, 1]} : vector<1x8x32xbf16> to vector<1x8x8xbf16>
    %83 = vector.extract_strided_slice %5 {offsets = [0, 0, 24], sizes = [1, 8, 8], strides = [1, 1, 1]} : vector<1x8x32xbf16> to vector<1x8x8xbf16>
    %cst_29 = arith.constant dense<0.000000e+00> : vector<1x8x8xf32>
    %84 = tpu.matmul %81, %82, %cst_29 {dimension_numbers = #tpu.dot_dimension_numbers<[2], [2], [1], [1], [0, 0, 0, 1, 1, 1], [0], [0]>} : vector<1x8x8xbf16>, vector<1x8x8xbf16>, vector<1x8x8xf32> -> vector<1x8x8xf32>
    %85 = vector.extract_strided_slice %6 {offsets = [0, 0, 3], sizes = [1, 8, 1], strides = [1, 1, 1]} : vector<1x8x4xf32> to vector<1x8x1xf32>
    %cst_30 = arith.constant dense<0xFF800000> : vector<1x8xf32>
    %86 = vector.multi_reduction <maximumf>, %84, %cst_30 [2] : vector<1x8x8xf32> to vector<1x8xf32>
    %87 = vector.shape_cast %86 : vector<1x8xf32> to vector<1x8x1xf32>
    %88 = arith.maximumf %85, %87 : vector<1x8x1xf32>
    %89 = arith.subf %85, %88 : vector<1x8x1xf32>
    %90 = math.exp %89 : vector<1x8x1xf32>
    %91 = vector.broadcast %88 : vector<1x8x1xf32> to vector<1x8x8xf32>
    %92 = arith.subf %84, %91 : vector<1x8x8xf32>
    %93 = math.exp %92 : vector<1x8x8xf32>
    %94 = vector.extract_strided_slice %7 {offsets = [0, 0, 3], sizes = [1, 8, 1], strides = [1, 1, 1]} : vector<1x8x4xf32> to vector<1x8x1xf32>
    %95 = arith.mulf %90, %94 : vector<1x8x1xf32>
    %cst_31 = arith.constant dense<0.000000e+00> : vector<1x8xf32>
    %96 = vector.multi_reduction <add>, %93, %cst_31 [2] : vector<1x8x8xf32> to vector<1x8xf32>
    %97 = vector.shape_cast %96 : vector<1x8xf32> to vector<1x8x1xf32>
    %98 = arith.addf %95, %97 : vector<1x8x1xf32>
    %99 = arith.truncf %93 : vector<1x8x8xf32> to vector<1x8x8xbf16>
    %cst_32 = arith.constant dense<0.000000e+00> : vector<1x8x8xf32>
    %100 = tpu.matmul %99, %83, %cst_32 {dimension_numbers = #tpu.dot_dimension_numbers<[2], [1], [1], [2], [0, 0, 0, 1, 1, 2], [0], [0]>} : vector<1x8x8xbf16>, vector<1x8x8xbf16>, vector<1x8x8xf32> -> vector<1x8x8xf32>
    %101 = vector.extract_strided_slice %8 {offsets = [0, 0, 24], sizes = [1, 8, 8], strides = [1, 1, 1]} : vector<1x8x32xf32> to vector<1x8x8xf32>
    %102 = vector.broadcast %90 : vector<1x8x1xf32> to vector<1x8x8xf32>
    %103 = arith.mulf %102, %101 : vector<1x8x8xf32>
    %104 = arith.addf %103, %100 : vector<1x8x8xf32>
    %105 = tpu.concatenate %16, %40, %64, %88 in 2 : vector<1x8x1xf32>, vector<1x8x1xf32>, vector<1x8x1xf32>, vector<1x8x1xf32> -> vector<1x8x4xf32>
    %c0_33 = arith.constant 0 : index
    %c0_34 = arith.constant 0 : index
    %c0_35 = arith.constant 0 : index
    %106 = vector.load %arg6[%c0_33, %c0_34, %c0_35] : memref<1x8x4xf32, #tpu.memory_space<vmem>>, vector<1x8x4xf32>
    tpu.vector_store %arg6[%c0_33, %c0_34, %c0_35], %105 {strides = array<i32>} : memref<1x8x4xf32, #tpu.memory_space<vmem>>, vector<1x8x4xf32>,
    %107 = tpu.concatenate %26, %50, %74, %98 in 2 : vector<1x8x1xf32>, vector<1x8x1xf32>, vector<1x8x1xf32>, vector<1x8x1xf32> -> vector<1x8x4xf32>
    %c0_36 = arith.constant 0 : index
    %c0_37 = arith.constant 0 : index
    %c0_38 = arith.constant 0 : index
    %108 = vector.load %arg7[%c0_36, %c0_37, %c0_38] : memref<1x8x4xf32, #tpu.memory_space<vmem>>, vector<1x8x4xf32>
    tpu.vector_store %arg7[%c0_36, %c0_37, %c0_38], %107 {strides = array<i32>} : memref<1x8x4xf32, #tpu.memory_space<vmem>>, vector<1x8x4xf32>,
    %109 = tpu.concatenate %32, %56, %80, %104 in 2 : vector<1x8x8xf32>, vector<1x8x8xf32>, vector<1x8x8xf32>, vector<1x8x8xf32> -> vector<1x8x32xf32>
    %c0_39 = arith.constant 0 : index
    %c0_40 = arith.constant 0 : index
    %c0_41 = arith.constant 0 : index
    %110 = vector.load %arg8[%c0_39, %c0_40, %c0_41] : memref<1x8x32xf32, #tpu.memory_space<vmem>>, vector<1x8x32xf32>
    tpu.vector_store %arg8[%c0_39, %c0_40, %c0_41], %109 {strides = array<i32>} : memref<1x8x32xf32, #tpu.memory_space<vmem>>, vector<1x8x32xf32>,
    %c0_i32_42 = arith.constant 0 : i32
    %111 = arith.cmpi eq, %arg1, %c0_i32_42 : i32
    %112 = arith.extui %111 : i1 to i32
    %c0_i32_43 = arith.constant 0 : i32
    %113 = arith.cmpi ne, %112, %c0_i32_43 : i32
    scf.if %113 {
      %c0_44 = arith.constant 0 : index
      %c0_45 = arith.constant 0 : index
      %c0_46 = arith.constant 0 : index
      %114 = vector.load %arg8[%c0_44, %c0_45, %c0_46] : memref<1x8x32xf32, #tpu.memory_space<vmem>>, vector<1x8x32xf32>
      %c0_47 = arith.constant 0 : index
      %c0_48 = arith.constant 0 : index
      %c0_49 = arith.constant 0 : index
      %115 = vector.load %arg7[%c0_47, %c0_48, %c0_49] : memref<1x8x4xf32, #tpu.memory_space<vmem>>, vector<1x8x4xf32>
      %116 = tpu.reciprocal %115 {approx = true} : vector<1x8x4xf32> -> vector<1x8x4xf32>
      %117 = vector.extract_strided_slice %114 {offsets = [0, 0, 0], sizes = [1, 8, 8], strides = [1, 1, 1]} : vector<1x8x32xf32> to vector<1x8x8xf32>
      %118 = vector.extract_strided_slice %116 {offsets = [0, 0, 0], sizes = [1, 8, 1], strides = [1, 1, 1]} : vector<1x8x4xf32> to vector<1x8x1xf32>
      %119 = vector.broadcast %118 : vector<1x8x1xf32> to vector<1x8x8xf32>
      %120 = arith.mulf %117, %119 : vector<1x8x8xf32>
      %121 = vector.extract_strided_slice %114 {offsets = [0, 0, 8], sizes = [1, 8, 8], strides = [1, 1, 1]} : vector<1x8x32xf32> to vector<1x8x8xf32>
      %122 = vector.extract_strided_slice %116 {offsets = [0, 0, 1], sizes = [1, 8, 1], strides = [1, 1, 1]} : vector<1x8x4xf32> to vector<1x8x1xf32>
      %123 = vector.broadcast %122 : vector<1x8x1xf32> to vector<1x8x8xf32>
      %124 = arith.mulf %121, %123 : vector<1x8x8xf32>
      %125 = vector.extract_strided_slice %114 {offsets = [0, 0, 16], sizes = [1, 8, 8], strides = [1, 1, 1]} : vector<1x8x32xf32> to vector<1x8x8xf32>
      %126 = vector.extract_strided_slice %116 {offsets = [0, 0, 2], sizes = [1, 8, 1], strides = [1, 1, 1]} : vector<1x8x4xf32> to vector<1x8x1xf32>
      %127 = vector.broadcast %126 : vector<1x8x1xf32> to vector<1x8x8xf32>
      %128 = arith.mulf %125, %127 : vector<1x8x8xf32>
      %129 = vector.extract_strided_slice %114 {offsets = [0, 0, 24], sizes = [1, 8, 8], strides = [1, 1, 1]} : vector<1x8x32xf32> to vector<1x8x8xf32>
      %130 = vector.extract_strided_slice %116 {offsets = [0, 0, 3], sizes = [1, 8, 1], strides = [1, 1, 1]} : vector<1x8x4xf32> to vector<1x8x1xf32>
      %131 = vector.broadcast %130 : vector<1x8x1xf32> to vector<1x8x8xf32>
      %132 = arith.mulf %129, %131 : vector<1x8x8xf32>
      %133 = tpu.concatenate %120, %124, %128, %132 in 2 : vector<1x8x8xf32>, vector<1x8x8xf32>, vector<1x8x8xf32>, vector<1x8x8xf32> -> vector<1x8x32xf32>
      %c0_50 = arith.constant 0 : index
      %c0_51 = arith.constant 0 : index
      %c0_52 = arith.constant 0 : index
      %134 = vector.load %arg5[%c0_50, %c0_51, %c0_52] : memref<1x8x32xf32, #tpu.memory_space<vmem>>, vector<1x8x32xf32>
      tpu.vector_store %arg5[%c0_50, %c0_51, %c0_52], %133 {strides = array<i32>} : memref<1x8x32xf32, #tpu.memory_space<vmem>>, vector<1x8x32xf32>,
    } else {
    }
    return
  }
  func.func @transform_0(%arg0: i32, %arg1: i32) -> (i32, i32, i32) {
    %c0_i32 = arith.constant 0 : i32
    %c0_i32_0 = arith.constant 0 : i32
    %c0_i32_1 = arith.constant 0 : i32
    return %arg0, %c0_i32, %c0_i32_0 : i32, i32, i32
  }
  func.func @transform_1(%arg0: i32, %arg1: i32) -> (i32, i32, i32) {
    %c0_i32 = arith.constant 0 : i32
    %c0_i32_0 = arith.constant 0 : i32
    return %arg0, %arg1, %c0_i32 : i32, i32, i32
  }
  func.func @transform_2(%arg0: i32, %arg1: i32) -> (i32, i32, i32) {
    %c0_i32 = arith.constant 0 : i32
    %c0_i32_0 = arith.constant 0 : i32
    return %arg0, %arg1, %c0_i32 : i32, i32, i32
  }
  func.func @transform_3(%arg0: i32, %arg1: i32) -> (i32, i32, i32) {
    %c0_i32 = arith.constant 0 : i32
    %c0_i32_0 = arith.constant 0 : i32
    %c0_i32_1 = arith.constant 0 : i32
    return %arg0, %c0_i32, %c0_i32_0 : i32, i32, i32
  }
}

</mosaic_0001>

<bundles_post_ra>
// kernel: multi_head_attention.5
= control target key start
LH: loop header
LB: loop body
LE: loop exit
PB: predicated region body
PF: predicated region fallthrough
CT: control target
= control target key end

     0   :  { %8 = vsyncpa [#allocation4], 0  ;;  %s184_s12 = smov [#allocation3]   ;;  %s232_s0 = inlined_call_operand.vmem [shape: f32[16,32], index: 0, kind: input, shape index: {}]   ;;  %s233_s1 = inlined_call_operand.hbm [shape: bf16[32,32], index: 1, kind: input, shape index: {}]   ;;  %s234_s2 = inlined_call_operand.vmem [shape: f32[1,32], index: 2, kind: input, shape index: {}]   ;;  %s235_s3 = inlined_call_operand.vmem [shape: bf16[16,32], index: 3, kind: output, shape index: {}]  }
   0x1   :  { %s16_s13 = sshll.u32 %s184_s12, 4  ;;  %s17_s13 = int_to_ptr.vmem [resolvable:$true] %s16_s13 }
   0x2   :  { %s170_s14 = scalar_lea.vmem %s17_s13, 256  ;;  %p175_p1 = scmp.lt.s32.totalorder %s17_s13, %s17_s13 }
   0x3   :  { %p171_p0 = scmp.ne.s32.totalorder %s17_s13, %s170_s14  ;;  %p176_p2 = scmp.lt.s32.totalorder %s170_s14, %s170_s14 }
   0x5   :  { %p177_p3 = por %p176_p2, %p175_p1 }
   0x7   :  { %p178_p4 = pnand %p177_p3, %p171_p0 }
   0x9   :  { %181 = shalt.err (!%p178_p4)
}
   0xa   :  { %s185_s15 = smov 64   ;;  %s186_s16 = smov 4  }
   0xb   :  { %22 = dma.hbm_to_vmem [thread:$0]  %s233_s1, 256, %s17_s13, [#allocation4], %s185_s15, %s185_s15, %s186_s16  }
   0xc   :  { %182 = dma.done.wait [#allocation4], 256  }
   0xd   :  { %183 = vsyncadd [#allocation4], 4294967040  ;;  %vm33_vm0 = vcmask 261120   ;;  %v187_v0 = vmov 0.0   ;;  %vm188_vm1 = vmmov 0   ;;  %v160_v1 = vld [vmem:[#allocation3 + $0x8] sm:$0xff]  }
   0xe   :  { %147 = vmatprep.subr.bf16.mxu0 %v187_v0  ;;  %151 = vmatprep.mubr.msk.bf16.mxu0 %vm188_vm1, %v187_v0  ;;  %34 = vst.msk [vmem:[#allocation2] sm:$0xff] %vm33_vm0, %v187_v0  ;;  %35 = vst.msk [vmem:[#allocation2 + $0x8] sm:$0xff] %vm33_vm0, %v187_v0  ;;  %v161_v2 = vld [vmem:[#allocation3] sm:$0xff]   ;;  %v38_v3 = vld [vmem:[%s232_s0] sm:$0xff]  ;;  %vm128_vm2 = vcmask 257024  }
   0xf   :  { %148 = vmatpush3.bf16.msra.mxu0 %v160_v1  ;;  %v39_v4 = vld [vmem:[%s232_s0 + $0x8] sm:$0xff]  ;;  %v139_v14 = vld [vmem:[%s234_s2] ss:$0 sm:$0xff] }
  0x10   :  { %149 = vmatprep.subr.bf16.mxu0 %v187_v0  ;;  %v40_v5 = vpack.c.bf16 %v39_v4, %v38_v3 }
  0x13   :  { %150 = vmatpush3.bf16.msra.mxu0 %v161_v2 }
  0x15   :  { %v36_v6 = vld [vmem:[#allocation2] sm:$0xff]  ;;  %v37_v10 = vld [vmem:[#allocation2 + $0x8] sm:$0xff] }
  0x16   :  { %152 = vmatmul.mubr.msk.bf16.vlgmr.msra.gmra.mxu0 %vm33_vm0, %v40_v5 }
  0xd6   :  { %v95_v7 = vpop.f32.mrf.mxu0 }
  0xd7   :  { %v102_v8 = vadd.f32 %v95_v7, %v36_v6 }
  0xd8   :  { %v153_v9 = vpop.f32.mrf.mxu0 }
  0xd9   :  { %104 = vst.msk [vmem:[#allocation2] sm:$0xff] %vm33_vm0, %v102_v8 }
  0xda   :  { %v98_v11 = vpop.f32.mrf.mxu0 }
  0xdb   :  { %v103_v12 = vadd.f32 %v98_v11, %v37_v10 }
  0xdc   :  { %v154_v13 = vpop.f32.mrf.mxu0 }
  0xdd   :  { %105 = vst.msk [vmem:[#allocation2 + $0x8] sm:$0xff] %vm33_vm0, %v103_v12 }
  0xe0   :  { %v109_v15 = vld [vmem:[#allocation2] sm:$0xff] }
  0xe1   :  { %v118_v16 = vadd.f32 %v139_v14, %v109_v15 }
  0xe3   :  { %v142_v17 = vpack.c.bf16 %v118_v16, %v118_v16 }
  0xe4   :  { %v110_v18 = vld [vmem:[#allocation2 + $0x8] sm:$0xff] }
  0xe5   :  { %129 = vst.msk [vmem:[%s235_s3] sm:$0xf] %vm128_vm2, %v142_v17  ;;  %v119_v19 = vadd.f32 %v139_v14, %v110_v18 }
  0xe7   :  { %v143_v20 = vpack.c.bf16 %v119_v19, %v119_v19 }
  0xe9   :  { %130 = vst.msk [vmem:[%s235_s3 + $0x4] sm:$0xf] %vm128_vm2, %v143_v20 }
  0xea   :  { %135 = vsyncpa [#allocation4], 1 }

// kernel: multi_head_attention.4
= control target key start
LH: loop header
LB: loop body
LE: loop exit
PB: predicated region body
PF: predicated region fallthrough
CT: control target
= control target key end

     0   :  { %vm19_vm0 = vcmask 261120   ;;  %v144_v0 = vmov 0.0   ;;  %vm145_vm1 = vmmov 0   ;;  %vm114_vm2 = vcmask 257024   ;;  %s192_s1 = inlined_call_operand.vmem [shape: bf16[32,32], index: 1, kind: input, shape index: {}]   ;;  %s193_s0 = inlined_call_operand.vmem [shape: f32[16,32], index: 0, kind: input, shape index: {}]   ;;  %s194_s2 = inlined_call_operand.vmem [shape: f32[1,32], index: 2, kind: input, shape index: {}]   ;;  %s195_s3 = inlined_call_operand.vmem [shape: bf16[16,32], index: 3, kind: output, shape index: {}]  }
   0x1   :  { %132 = vmatprep.subr.bf16.mxu0 %v144_v0  ;;  %v142_v1 = vld [vmem:[%s192_s1 + $0x8] sm:$0xff]   ;;  %136 = vmatprep.mubr.msk.bf16.mxu0 %vm145_vm1, %v144_v0  ;;  %20 = vst.msk [vmem:[#allocation2] sm:$0xff] %vm19_vm0, %v144_v0  ;;  %21 = vst.msk [vmem:[#allocation2 + $0x8] sm:$0xff] %vm19_vm0, %v144_v0  ;;  %v143_v2 = vld [vmem:[%s192_s1] sm:$0xff]  }
   0x2   :  { %133 = vmatpush3.bf16.msra.mxu0 %v142_v1  ;;  %v24_v3 = vld [vmem:[%s193_s0] sm:$0xff]  ;;  %v25_v4 = vld [vmem:[%s193_s0 + $0x8] sm:$0xff] }
   0x3   :  { %134 = vmatprep.subr.bf16.mxu0 %v144_v0  ;;  %v26_v5 = vpack.c.bf16 %v25_v4, %v24_v3  ;;  %v124_v14 = vld [vmem:[%s194_s2] ss:$0 sm:$0xff] }
   0x6   :  { %135 = vmatpush3.bf16.msra.mxu0 %v143_v2 }
   0x8   :  { %v22_v6 = vld [vmem:[#allocation2] sm:$0xff]  ;;  %v23_v10 = vld [vmem:[#allocation2 + $0x8] sm:$0xff] }
   0x9   :  { %137 = vmatmul.mubr.msk.bf16.vlgmr.msra.gmra.mxu0 %vm19_vm0, %v26_v5 }
  0xc9   :  { %v81_v7 = vpop.f32.mrf.mxu0 }
  0xca   :  { %v88_v8 = vadd.f32 %v81_v7, %v22_v6 }
  0xcb   :  { %v138_v9 = vpop.f32.mrf.mxu0 }
  0xcc   :  { %90 = vst.msk [vmem:[#allocation2] sm:$0xff] %vm19_vm0, %v88_v8 }
  0xcd   :  { %v84_v11 = vpop.f32.mrf.mxu0 }
  0xce   :  { %v89_v12 = vadd.f32 %v84_v11, %v23_v10 }
  0xcf   :  { %v139_v13 = vpop.f32.mrf.mxu0 }
  0xd0   :  { %91 = vst.msk [vmem:[#allocation2 + $0x8] sm:$0xff] %vm19_vm0, %v89_v12 }
  0xd3   :  { %v95_v15 = vld [vmem:[#allocation2] sm:$0xff] }
  0xd4   :  { %v104_v16 = vadd.f32 %v124_v14, %v95_v15 }
  0xd6   :  { %v127_v17 = vpack.c.bf16 %v104_v16, %v104_v16 }
  0xd7   :  { %v96_v18 = vld [vmem:[#allocation2 + $0x8] sm:$0xff] }
  0xd8   :  { %115 = vst.msk [vmem:[%s195_s3] sm:$0xf] %vm114_vm2, %v127_v17  ;;  %v105_v19 = vadd.f32 %v124_v14, %v96_v18 }
  0xda   :  { %v128_v20 = vpack.c.bf16 %v105_v19, %v105_v19 }
  0xdc   :  { %116 = vst.msk [vmem:[%s195_s3 + $0x4] sm:$0xf] %vm114_vm2, %v128_v20 }

// kernel: multi_head_attention.7
= control target key start
LH: loop header
LB: loop body
LE: loop exit
PB: predicated region body
PF: predicated region fallthrough
CT: control target
= control target key end

     0   :  { %8 = vsyncpa [#allocation6], 0  ;;  %s1477_s0 = inlined_call_operand.vmem [shape: bf16[2,8,32], index: 0, kind: input, shape index: {}]   ;;  %s1478_s1 = inlined_call_operand.vmem [shape: bf16[2,8,32], index: 1, kind: input, shape index: {}]   ;;  %s1479_s2 = inlined_call_operand.vmem [shape: bf16[2,8,32], index: 2, kind: input, shape index: {}]   ;;  %s1480_s3 = inlined_call_operand.hbm [shape: f32[2,8,32], index: 3, kind: output, shape index: {}]  }
   0x1   :  { %10 = vsyncpa [#allocation6 + $0x1], 0  ;;  %s1233_s12 = smov 0   ;;  %s1235_s13 = smov 0  }
   0x2   :  { %s1237_s14 = smov 0   ;;  %s1239_s15 = smov 0  }
   0x3   :  { %s1241_s16 = smov 0   ;;  %s1243_s17 = smov 0  }
   0x4 LB: > { %s932_s18 = sadd.s32 4294967295, %s1197_s17   ;;  %s933_s19 = sadd.s32 4294967294, %s1197_s17   ;;  %s1197_s17 = sphi %s1243_s17, %s16_s17   ;;  %s1193_s16 = sphi %s1241_s16, %s1487_s16   ;;  %s1189_s15 = sphi %s1239_s15, %s1486_s15   ;;  %s1185_s14 = sphi %s1237_s14, %s1485_s14   ;;  %s1181_s13 = sphi %s1235_s13, %s1484_s13   ;;  %s1177_s12 = sphi %s1233_s12, %s1483_s12  }
   0x5   : > { %s28_s20 = sadd.s32 1, %s1193_s16  ;;  %s117_s21 = sadd.s32 1, %s1185_s14 }
   0x6   : > { %p30_p0 = scmp.ge.s32.totalorder %s28_s20, 2  ;;  %p127_p1 = scmp.ne.s32.totalorder %s1185_s14, %s1181_s13 }
   0x7   : > { %p128_p2 = scmp.eq.s32.totalorder %s932_s18, 1  ;;  %p133_p3 = scmp.ne.s32.totalorder %s1181_s13, %s1177_s12 }
   0x8   : > { %s1489_s20 = smov (%p30_p0, %s28_s20), 0  ;;  %p134_p5 = scmp.eq.s32.totalorder %s933_s19, 1 }
   0x9   : > { %p1273_p4 = por %p128_p2, %p127_p1  ;;  %s114_s23 = ssub.s32 %s1193_s16, %s1489_s20 }
   0xa   : > { %p936_p6 = scmp.ge.s32.totalorder %s1197_s17, 1  ;;  %p115_p7 = scmp.eq.s32.totalorder %s114_s23, 0 }
   0xb   : > { %p1280_p8 = por %p134_p5, %p133_p3  ;;  %p179_p9 = scmp.lt.s32.totalorder %s1197_s17, 3 }
   0xc   : > { %s1286_s25 = scalar_select %p115_p7, %s1185_s14, %s117_s21  }
   0xd   : > { %p180_p10 = pnand %p936_p6, %p179_p9 }
   0xe   : > { %p216_p11 = scmp.lt.s32.totalorder (!%p180_p10), %s1189_s15, 1  ;;  %s1203_s7 = smov (!%p180_p10), 120  }
   0xf   : > { %183 = sbr.rel (%p180_p10) target bundleno = 1359 (0x54f), region = 32  ;;  %s1204_s8 = smov (!%p180_p10), 112  }
  0x10   : > { %s1205_s9 = smov (!%p180_p10), 104   ;;  %s1209_s19 = smov (!%p180_p10), 8  }
  0x11   : > { %s1210_s21 = smov (!%p180_p10), 16   ;;  %s1211_s23 = smov (!%p180_p10), 24  }
  0x12   : > { %s953_s28 = sshll.u32 (!%p180_p10), %s1189_s15, 7 }
  0x14   : > { %v1199_v0 = vmov 0.0   ;;  %vm1200_vm0 = vmmov 0   ;;  %s217_s26 = scalar_select %p216_p11, %s1189_s15, 1  ;;  %vm250_vm1 = vcmask 64512   ;;  %vm239_vm2 = vcmask 31744  }
  0x15   : > { %972 = vmatprep.subr.bf16.mxu0 %v1199_v0  ;;  %974 = vmatprep.mubr.msk.bf16.mxu0 %vm1200_vm0, %v1199_v0  ;;  %v1201_v4 = vmov -inf   ;;  %241 = vst.msk [vmem:[#allocation3] sm:$0xff] %vm239_vm2, %v1199_v0  ;;  %v1202_v10 = vmov 0   ;;  %vm321_vm3 = vcmask 1043456   ;;  %v1206_v45 = vmov 1   ;;  %s1212_s15 = smov [#allocation5]  }
  0x16   : > { %978 = vmatprep.subr.bf16.mxu1 %v1199_v0  ;;  %980 = vmatprep.mubr.msk.bf16.mxu1 %vm1200_vm0, %v1199_v0  ;;  %s1296_s27 = sshll.u32 %s217_s26, 2  ;;  %240 = vst.msk [vmem:[#allocation2] sm:$0xff] %vm239_vm2, %v1201_v4  ;;  %v1207_v51 = vmov 2   ;;  %vm242_vm4 = vcmask 261120   ;;  %v1208_v57 = vmov 3   ;;  %vm771_vm5 = vcmask 7168  }
  0x17   : > { %s226_s30 = scalar_lea.vmem %s1478_s1, %s1296_s27  ;;  %s219_s6 = scalar_lea.vmem %s1477_s0, %s1296_s27  ;;  %1088 = vset.pattern.permute.xlu0 %v1202_v10  ;;  %1089 = vset.pattern.permute.xlu1 %v1206_v45  ;;  %243 = vst.msk [vmem:[#allocation4] sm:$0xff] %vm242_vm4, %v1199_v0  ;;  %vm773_vm6 = vcmask 15360   ;;  %vm775_vm7 = vcmask 23552   ;;  %vm784_vm8 = vcmask 130048   ;;  %vm786_vm9 = vcmask 195584  }
  0x18   : > { %v245_v1 = vld [vmem:[%s226_s30] sm:$0xf]  ;;  %s233_s18 = scalar_lea.vmem %s1479_s2, %s1296_s27  ;;  %s213_s26 = sand.u32 1, %s1181_s13  }
  0x19   : > { %v255_v2 = vsel %vm250_vm1, %v245_v1, 0  ;;  %v244_v3 = vld [vmem:[%s219_s6] sm:$0xf]  ;;  %v944_v11 = vcombine.low %v245_v1, %v245_v1  ;;  %s937_s27 = sshll.u32 %s213_s26, 3  ;;  %s1435_s6 = scalar_lea.hbm %s1480_s3, %s953_s28 }
  0x1a   : > { %973 = vmatpush3.bf16.xpose.msra.mxu0 %v255_v2  ;;  %v943_v12 = vcombine.low %v244_v3, %v244_v3  ;;  %v1332_v16 = vld [vmem:[%s233_s18] sm:$0xf]  ;;  %s215_s29 = scalar_lea.vmem [#allocation5], %s937_s27 }
  0x1b   : > { %990 = vmatprep.subr.bf16.mxu0 %v1199_v0  ;;  %380 = vrot.lane.b32.xlu1 %v944_v11, %s1203_s7  ;;  %v323_v17 = vsel %vm321_vm3, %v1332_v16, 0  ;;  %v946_v2 = vcombine.low %v1332_v16, %v1332_v16  ;;  %s835_s30 = sshll.u32 %s215_s29, 4  ;;  %s836_s30 = int_to_ptr.vmem [resolvable:$true] %s835_s30 }
  0x1c   : > { %979 = vmatpush3.bf16.msra.mxu1 %v323_v17 }
  0x1d   : > { %v1322_v13 = vld [vmem:[#allocation2] sm:$0xff]  ;;  %984 = vmatprep.subr.bf16.mxu1 %v1199_v0 }
  0x1f   : > { %375 = vrot.lane.b32.xlu1 %v943_v12, %s1203_s7 }
  0x21   : > { %975 = vmatmul.mubr.msk.bf16.vlgmr.msra.gmra.mxu0 %vm250_vm1, %v244_v3 }
  0x22   : > { %992 = vmatprep.mubr.msk.bf16.mxu0 %vm1200_vm0, %v1199_v0 }
  0x23   : > { %513 = vrot.lane.b32.xlu1 %v944_v11, %s1204_s8 }
  0x27   : > { %511 = vrot.lane.b32.xlu1 %v943_v12, %s1204_s8 }
  0x2b   : > { %643 = vrot.lane.b32.xlu1 %v944_v11, %s1205_s9 }
  0x2f   : > { %641 = vrot.lane.b32.xlu1 %v943_v12, %s1205_s9 }
  0x8d   : > { %v381_v21 = vpop.permute.xlu1 %380 }
  0x8e   : > { %v386_v24 = vsel %vm250_vm1, %v381_v21, 0 }
  0x91   : > { %v376_v22 = vpop.permute.xlu1 %375 }
  0x95   : > { %v514_v26 = vpop.permute.xlu1 %513 }
  0x96   : > { %v519_v28 = vsel %vm250_vm1, %v514_v26, 0 }
  0x99   : > { %v512_v27 = vpop.permute.xlu1 %511 }
  0x9d   : > { %v644_v29 = vpop.permute.xlu1 %643 }
  0x9e   : > { %v649_v30 = vsel %vm250_vm1, %v644_v29, 0 }
  0xa1   : > { %v642_v31 = vpop.permute.xlu1 %641 }
  0xe1   : > { %v291_v5 = vpop.f32.mrf.mxu0 }
  0xe2   : > { %v297_v6 = vsel %vm250_vm1, %v291_v5, -inf }
  0xe3   : > { %298 = vmax.xlane.f32.xlu0 %v297_v6  ;;  %v976_v7 = vpop.f32.mrf.mxu0 }
  0xe5   : > { %v294_v8 = vpop.f32.mrf.mxu0 }
  0xe7   : > { %v977_v9 = vpop.f32.mrf.mxu0 }
 0x16c   : > { %v299_v14 = vpop.xlane.xlu0 %298 }
 0x16d   : > { %v1325_v15 = vmax.f32 %v1322_v13, %v299_v14 }
 0x16f   : > { %306 = vperm.xlu0 %1088, %v1325_v15   ;;  %v301_v53 = vsub.f32 %v1322_v13, %v1325_v15 }
 0x171   : > { %v302_v54 = vmul.f32 1.442695, %v301_v53 }
 0x173   : > { %1090 = vset.pattern.permute.xlu0 %v1207_v51 }
 0x1ea   : > { %v307_v18 = vpop.permute.xlu0 %306 }
 0x1eb   : > { %v309_v19 = vsub.f32 %v291_v5, %v307_v18 }
 0x1ed   : > { %v310_v20 = vmul.f32 1.442695, %v309_v19 }
 0x1ef   : > { %1103 = vpow2.f32 %v310_v20 }
 0x1f0   : > { %1105 = vpow2.f32 %v302_v54 }
 0x1fc   : > { %v1337_v23 = vpop.eup %1103 }
 0x1fd   : > { %v317_v25 = vpack.c.bf16 %v1337_v23, %v1337_v23  ;;  %v1373_v60 = vpop.eup %1105  ;;  %v313_v4 = vsel %vm250_vm1, %v1337_v23, 0.0 }
 0x1ff   : > { %981 = vmatmul.mubr.msk.bf16.vlgmr.msra.gmra.mxu1 %vm250_vm1, %v317_v25 }
 0x200   : > { %985 = vmatpush3.bf16.xpose.msra.mxu1 %v386_v24  ;;  %986 = vmatprep.mubr.msk.bf16.mxu1 %vm1200_vm0, %v1199_v0 }
 0x201   : > { %996 = vmatprep.subr.bf16.mxu1 %v1199_v0 }
 0x207   : > { %987 = vmatmul.mubr.msk.bf16.vlgmr.msra.gmra.mxu1 %vm250_vm1, %v376_v22 }
 0x208   : > { %997 = vmatpush3.bf16.xpose.msra.mxu1 %v519_v28  ;;  %998 = vmatprep.mubr.msk.bf16.mxu1 %vm1200_vm0, %v1199_v0 }
 0x209   : > { %1008 = vmatprep.subr.bf16.mxu1 %v1199_v0 }
 0x20f   : > { %999 = vmatmul.mubr.msk.bf16.vlgmr.msra.gmra.mxu1 %vm250_vm1, %v512_v27 }
 0x210   : > { %1009 = vmatpush3.bf16.xpose.msra.mxu1 %v649_v30  ;;  %1010 = vmatprep.mubr.msk.bf16.mxu1 %vm1200_vm0, %v1199_v0 }
 0x217   : > { %1011 = vmatmul.mubr.msk.bf16.vlgmr.msra.gmra.mxu1 %vm250_vm1, %v642_v31 }
 0x2bf   : > { %v1356_v32 = vpop.f32.mrf.mxu1 }
 0x2c1   : > { %v982_v33 = vpop.f32.mrf.mxu1 }
 0x2c3   : > { %v362_v34 = vpop.f32.mrf.mxu1 }
 0x2c5   : > { %v983_v35 = vpop.f32.mrf.mxu1 }
 0x2c7   : > { %v422_v36 = vpop.f32.mrf.mxu1 }
 0x2c8   : > { %v428_v37 = vsel %vm250_vm1, %v422_v36, -inf }
 0x2c9   : > { %429 = vmax.xlane.f32.xlu1 %v428_v37  ;;  %v988_v38 = vpop.f32.mrf.mxu1 }
 0x2cb   : > { %v425_v39 = vpop.f32.mrf.mxu1 }
 0x2cd   : > { %v989_v40 = vpop.f32.mrf.mxu1 }
 0x2cf   : > { %v555_v41 = vpop.f32.mrf.mxu1 }
 0x2d0   : > { %v561_v42 = vsel %vm250_vm1, %v555_v41, -inf }
 0x2d1   : > { %562 = vmax.xlane.f32.xlu0 %v561_v42  ;;  %v1000_v43 = vpop.f32.mrf.mxu1 }
 0x2d3   : > { %v558_v44 = vpop.f32.mrf.mxu1 }
 0x2d5   : > { %v1001_v46 = vpop.f32.mrf.mxu1 }
 0x2d7   : > { %v685_v47 = vpop.f32.mrf.mxu1 }
 0x2d8   : > { %v691_v48 = vsel %vm250_vm1, %v685_v47, -inf }
 0x2d9   : > { %692 = vmax.xlane.f32.xlu1 %v691_v48  ;;  %v1012_v49 = vpop.f32.mrf.mxu1 }
 0x2db   : > { %v688_v50 = vpop.f32.mrf.mxu1 }
 0x2dd   : > { %v1013_v52 = vpop.f32.mrf.mxu1 }
 0x352   : > { %v430_v55 = vpop.xlane.xlu1 %429 }
 0x353   : > { %v1366_v56 = vmax.f32 %v1322_v13, %v430_v55 }
 0x355   : > { %437 = vperm.xlu1 %1089, %v1366_v56   ;;  %v772_v62 = vsel %vm771_vm5, %v1325_v15, %v1366_v56  ;;  %v432_v28 = vsub.f32 %v1322_v13, %v1366_v56 }
 0x357   : > { %v433_v33 = vmul.f32 1.442695, %v432_v28 }
 0x359   : > { %1091 = vset.pattern.permute.xlu1 %v1208_v57 }
 0x35a   : > { %v563_v58 = vpop.xlane.xlu0 %562 }
 0x35b   : > { %v564_v59 = vmax.f32 %v1322_v13, %v563_v58 }
 0x35d   : > { %570 = vperm.xlu0 %1090, %v564_v59   ;;  %v774_v1 = vsel %vm773_vm6, %v772_v62, %v564_v59  ;;  %v565_v18 = vsub.f32 %v1322_v13, %v564_v59 }
 0x35f   : > { %v566_v22 = vmul.f32 1.442695, %v565_v18 }
 0x361   : > { %1092 = vset.pattern.permute.xlu0 %v1202_v10 }
 0x362   : > { %v693_v61 = vpop.xlane.xlu1 %692  ;;  %367 = vperm.xlu0 %1092, %v1373_v60  }
 0x363   : > { %v694_v63 = vmax.f32 %v1322_v13, %v693_v61 }
 0x365   : > { %v776_v3 = vsel %vm775_vm7, %v774_v1, %v694_v63  ;;  %700 = vperm.xlu1 %1091, %v694_v63   ;;  %v695_v35 = vsub.f32 %v1322_v13, %v694_v63 }
 0x366   : > { %778 = vst.msk [vmem:[#allocation2] sm:$0xff] %vm239_vm2, %v776_v3  ;;  %1094 = vset.pattern.permute.xlu0 %v1207_v51 }
 0x367   : > { %v696_v37 = vmul.f32 1.442695, %v695_v35 }
 0x369   : > { %452 = vrot.lane.b32.xlu1 %v946_v2, %s1203_s7  ;;  %s822_s7 = scalar_lea.sflag [#allocation6], %s213_s26 }
 0x36a   : > { %1093 = vset.pattern.permute.xlu1 %v1206_v45 }
 0x36d   : > { %582 = vrot.lane.b32.xlu1 %v946_v2, %s1204_s8  ;;  %s1121_s8 = scalar_lea.vmem %s836_s30, 128 }
 0x36e   : > { %p1122_p12 = scmp.ne.s32.totalorder %s836_s30, %s1121_s8 }
 0x370   : > { %p1123_p13 = pnand %p1122_p12, %p1273_p4 }
 0x371   : > { %712 = vrot.lane.b32.xlu1 %v946_v2, %s1205_s9  ;;  %s1125_s9 = sshll.u32 %s1212_s15, 4  ;;  %s1126_s9 = int_to_ptr.vmem [resolvable:$false] %s1125_s9 }
 0x372   : > { %p1124_p0 = pneg %p1123_p13  ;;  %s1127_s10 = scalar_lea.vmem %s1126_s9, 256 }
 0x373   : > { %p1128_p1 = scmp.lt.s32.totalorder %s836_s30, %s1126_s9  ;;  %p1129_p2 = scmp.lt.s32.totalorder %s1127_s10, %s1121_s8 }
 0x375   : > { %p1130_p3 = por %p1129_p2, %p1128_p1 }
 0x377   : > { %p1131_p5 = pnand %p1130_p3, %p1124_p0 }
 0x395   : > { %314 = vadd.xlane.f32.xlu1 %v313_v4 }
 0x3d0   : > { %v438_v5 = vpop.permute.xlu1 %437 }
 0x3d1   : > { %v440_v6 = vsub.f32 %v422_v36, %v438_v5 }
 0x3d3   : > { %v441_v7 = vmul.f32 1.442695, %v440_v6 }
 0x3d5   : > { %1107 = vpow2.f32 %v441_v7 }
 0x3d8   : > { %v571_v8 = vpop.permute.xlu0 %570 }
 0x3d9   : > { %v573_v9 = vsub.f32 %v555_v41, %v571_v8  ;;  %v248_v41 = vld [vmem:[#allocation3] sm:$0xff] }
 0x3db   : > { %v574_v11 = vmul.f32 1.442695, %v573_v9 }
 0x3dd   : > { %1109 = vpow2.f32 %v574_v11 }
 0x3e0   : > { %v701_v12 = vpop.permute.xlu1 %700 }
 0x3e1   : > { %v703_v14 = vsub.f32 %v685_v47, %v701_v12  ;;  %v312_v47 = vmul.f32 %v1373_v60, %v248_v41 }
 0x3e2   : > { %v1108_v15 = vpop.eup %1107 }
 0x3e3   : > { %v704_v16 = vmul.f32 1.442695, %v703_v14  ;;  %v444_v17 = vsel %vm250_vm1, %v1108_v15, 0.0  ;;  %v448_v21 = vpack.c.bf16 %v1108_v15, %v1108_v15  ;;  %v249_v14 = vld [vmem:[#allocation4] sm:$0xff] }
 0x3e4   : > { %v453_v19 = vpop.permute.xlu1 %452  ;;  %445 = vadd.xlane.f32.xlu0 %v444_v17 }
 0x3e5   : > { %1111 = vpow2.f32 %v704_v16  ;;  %v458_v20 = vsel %vm321_vm3, %v453_v19, 0 }
 0x3e6   : > { %991 = vmatpush3.bf16.msra.mxu0 %v458_v20  ;;  %1113 = vpow2.f32 %v566_v22 }
 0x3e7   : > { %1002 = vmatprep.subr.bf16.mxu0 %v1199_v0  ;;  %1115 = vpow2.f32 %v433_v33 }
 0x3e8   : > { %v583_v23 = vpop.permute.xlu1 %582  ;;  %1117 = vpow2.f32 %v696_v37 }
 0x3e9   : > { %993 = vmatmul.mubr.msk.bf16.vlgmr.msra.gmra.mxu0 %vm250_vm1, %v448_v21  ;;  %v588_v24 = vsel %vm321_vm3, %v583_v23, 0 }
 0x3ea   : > { %v1110_v25 = vpop.eup %1109  ;;  %1003 = vmatpush3.bf16.msra.mxu0 %v588_v24  ;;  %1004 = vmatprep.mubr.msk.bf16.mxu0 %vm1200_vm0, %v1199_v0 }
 0x3eb   : > { %v577_v26 = vsel %vm250_vm1, %v1110_v25, 0.0  ;;  %1014 = vmatprep.subr.bf16.mxu0 %v1199_v0  ;;  %v581_v29 = vpack.c.bf16 %v1110_v25, %v1110_v25 }
 0x3ec   : > { %578 = vadd.xlane.f32.xlu1 %v577_v26  ;;  %v713_v27 = vpop.permute.xlu1 %712 }
 0x3ed   : > { %v718_v30 = vsel %vm321_vm3, %v713_v27, 0 }
 0x3f1   : > { %1005 = vmatmul.mubr.msk.bf16.vlgmr.msra.gmra.mxu0 %vm250_vm1, %v581_v29 }
 0x3f2   : > { %v1112_v31 = vpop.eup %1111  ;;  %1015 = vmatpush3.bf16.msra.mxu0 %v718_v30  ;;  %1016 = vmatprep.mubr.msk.bf16.mxu0 %vm1200_vm0, %v1199_v0  ;;  %v368_v0 = vpop.permute.xlu0 %367 }
 0x3f3   : > { %v707_v34 = vsel %vm250_vm1, %v1112_v31, 0.0  ;;  %v711_v36 = vpack.c.bf16 %v1112_v31, %v1112_v31  ;;  %v1114_v38 = vpop.eup %1113  ;;  %v370_v16 = vmul.f32 %v368_v0, %v249_v14 }
 0x3f4   : > { %708 = vadd.xlane.f32.xlu1 %v707_v34  ;;  %v1116_v39 = vpop.eup %1115  ;;  %v576_v46 = vmul.f32 %v1114_v38, %v248_v41 }
 0x3f5   : > { %v1118_v40 = vpop.eup %1117  ;;  %v443_v43 = vmul.f32 %v1116_v39, %v248_v41  ;;  %v371_v22 = vadd.f32 %v370_v16, %v1356_v32 }
 0x3f6   : > { %v706_v52 = vmul.f32 %v1118_v40, %v248_v41 }
 0x3f9   : > { %1017 = vmatmul.mubr.msk.bf16.vlgmr.msra.gmra.mxu0 %vm250_vm1, %v711_v36 }
 0x3fa   : > { %632 = vperm.xlu0 %1094, %v1114_v38  }
 0x3fe   : > { %1100 = vset.pattern.permute.xlu0 %v1208_v57 }
 0x405   : > { %502 = vperm.xlu1 %1093, %v1116_v39  }
 0x409   : > { %1095 = vset.pattern.permute.xlu1 %v1208_v57 }
 0x40a   : > { %762 = vperm.xlu1 %1095, %v1118_v40  }
 0x40e   : > { %1096 = vset.pattern.permute.xlu1 %v1202_v10 }
 0x41e   : > { %v315_v13 = vpop.xlane.xlu1 %314 }
 0x41f   : > { %v316_v50 = vadd.f32 %v315_v13, %v312_v47 }
 0x46d   : > { %v446_v42 = vpop.xlane.xlu0 %445 }
 0x46e   : > { %v447_v48 = vadd.f32 %v446_v42, %v443_v43 }
 0x470   : > { %v779_v54 = vsel %vm771_vm5, %v316_v50, %v447_v48 }
 0x475   : > { %v579_v44 = vpop.xlane.xlu1 %578  ;;  %v633_v15 = vpop.permute.xlu0 %632 }
 0x476   : > { %v580_v49 = vadd.f32 %v579_v44, %v576_v46  ;;  %v635_v19 = vmul.f32 %v633_v15, %v249_v14 }
 0x478   : > { %v780_v56 = vsel %vm773_vm6, %v779_v54, %v580_v49 }
 0x47d   : > { %v709_v53 = vpop.xlane.xlu1 %708 }
 0x47e   : > { %v710_v55 = vadd.f32 %v709_v53, %v706_v52 }
 0x480   : > { %v781_v10 = vsel %vm775_vm7, %v780_v56, %v710_v55 }
 0x481   : > { %782 = vst.msk [vmem:[#allocation3] sm:$0xff] %vm239_vm2, %v781_v10 }
 0x488   : > { %v794_v58 = vld [vmem:[#allocation3] sm:$0xff] }
 0x489   : > { %1119 = vrcp.f32 %v794_v58 }
 0x496   : > { %v1120_v59 = vpop.eup %1119 }
 0x497   : > { %798 = vperm.xlu1 %1096, %v1120_v59  }
 0x49b   : > { %1097 = vset.pattern.permute.xlu1 %v1206_v45 }
 0x49c   : > { %803 = vperm.xlu1 %1097, %v1120_v59  }
 0x4a0   : > { %1098 = vset.pattern.permute.xlu1 %v1207_v51  ;;  %v503_v51 = vpop.permute.xlu1 %502 }
 0x4a1   : > { %v505_v17 = vmul.f32 %v503_v51, %v249_v14 }
 0x4a4   : > { %v763_v8 = vpop.permute.xlu1 %762 }
 0x4a5   : > { %v765_v23 = vmul.f32 %v763_v8, %v249_v14 }
 0x4a9   : > { %v494_v60 = vpop.f32.mrf.mxu0 }
 0x4aa   : > { %507 = vrot.lane.b32.xlu1 %v494_v60, %s1209_s19 }
 0x4ab   : > { %v994_v61 = vpop.f32.mrf.mxu0 }
 0x4ad   : > { %v497_v62 = vpop.f32.mrf.mxu0 }
 0x4af   : > { %v995_v63 = vpop.f32.mrf.mxu0 }
 0x4b1   : > { %v624_v1 = vpop.f32.mrf.mxu0 }
 0x4b2   : > { %637 = vrot.lane.b32.xlu1 %v624_v1, %s1210_s21 }
 0x4b3   : > { %v1006_v2 = vpop.f32.mrf.mxu0 }
 0x4b5   : > { %v627_v3 = vpop.f32.mrf.mxu0 }
 0x4b7   : > { %v1007_v4 = vpop.f32.mrf.mxu0 }
 0x4b9   : > { %v754_v5 = vpop.f32.mrf.mxu0 }
 0x4ba   : > { %767 = vrot.lane.b32.xlu1 %v754_v5, %s1211_s23 }
 0x4bb   : > { %v1018_v6 = vpop.f32.mrf.mxu0 }
 0x4bd   : > { %v757_v45 = vpop.f32.mrf.mxu0 }
 0x4be   : > { %808 = vperm.xlu1 %1098, %v1120_v59  }
 0x4bf   : > { %v1019_v7 = vpop.f32.mrf.mxu0 }
 0x4c2   : > { %1099 = vset.pattern.permute.xlu1 %v1208_v57 }
 0x4c3   : > { %813 = vperm.xlu1 %1099, %v1120_v59  }
 0x512   : > { %v799_v9 = vpop.permute.xlu1 %798 }
 0x517   : > { %v804_v11 = vpop.permute.xlu1 %803 }
 0x51c   : > { %v508_v12 = vpop.permute.xlu1 %507 }
 0x51d   : > { %v510_v20 = vadd.f32 %v508_v12, %v505_v17 }
 0x51f   : > { %v783_v24 = vsel %vm250_vm1, %v371_v22, %v510_v20 }
 0x524   : > { %v638_v18 = vpop.permute.xlu1 %637 }
 0x525   : > { %v640_v21 = vadd.f32 %v638_v18, %v635_v19 }
 0x527   : > { %v785_v26 = vsel %vm784_vm8, %v783_v24, %v640_v21 }
 0x52c   : > { %v768_v57 = vpop.permute.xlu1 %767 }
 0x52d   : > { %v770_v25 = vadd.f32 %v768_v57, %v765_v23 }
 0x52f   : > { %v787_v27 = vsel %vm786_vm9, %v785_v26, %v770_v25 }
 0x530   : > { %789 = vst.msk [vmem:[#allocation4] sm:$0xff] %vm242_vm4, %v787_v27 }
 0x537   : > { %v793_v28 = vld [vmem:[#allocation4] sm:$0xff] }
 0x538   : > { %v801_v29 = vmul.f32 %v799_v9, %v793_v28  ;;  %v806_v30 = vmul.f32 %v804_v11, %v793_v28 }
 0x539   : > { %v809_v32 = vpop.permute.xlu1 %808 }
 0x53a   : > { %v811_v31 = vmul.f32 %v809_v32, %v793_v28  ;;  %v817_v33 = vsel %vm250_vm1, %v801_v29, %v806_v30 }
 0x53c   : > { %v818_v36 = vsel %vm784_vm8, %v817_v33, %v811_v31 }
 0x53e   : > { %v814_v34 = vpop.permute.xlu1 %813 }
 0x53f   : > { %v816_v35 = vmul.f32 %v814_v34, %v793_v28 }
 0x541   : > { %v819_v37 = vsel %vm786_vm9, %v818_v36, %v816_v35 }
 0x542   : > { %820 = vst.msk [vmem:[%s215_s29] sm:$0xff] %vm242_vm4, %v819_v37 }
 0x543   : > { %1134 = shalt.err (!%p1131_p5)
}
 0x544   : > { %s1135_s11 = scalar_lea.hbm %s1435_s6, 128  ;;  %s1139_s21 = scalar_lea.hbm %s1480_s3, 256 }
 0x545   : > { %p1136_p6 = scmp.ne.s32.totalorder %s1435_s6, %s1135_s11  ;;  %p1140_p10 = scmp.lt.s32.totalorder %s1435_s6, %s1480_s3 }
 0x546   : > { %p1141_p11 = scmp.lt.s32.totalorder %s1139_s21, %s1135_s11 }
 0x547   : > { %p1137_p7 = pnand %p1136_p6, %p1273_p4 }
 0x548   : > { %p1142_p12 = por %p1141_p11, %p1140_p10 }
 0x549   : > { %p1138_p9 = pneg %p1137_p7 }
 0x54b   : > { %p1143_p13 = pnand %p1142_p12, %p1138_p9 }
 0x54d   : > { %1146 = shalt.err (!%p1143_p13)
}
 0x54e   : > { %1020 = dma.vmem_to_hbm [thread:$0]  (%p1273_p4), %s836_s30, 128, %s1435_s6, %s822_s7  }
 0x54f PF: > { %p1026_p0 = scmp.ge.s32.totalorder %s1197_s17, 2  ;;  %s847_s27 = sand.u32 1, %s1177_s12  }
 0x550   : > { %s848_s28 = scalar_lea.sflag [#allocation6], %s847_s27 }
 0x551   : > { %p1023_p1 = pnand %p1026_p0, %p1280_p8 }
 0x553   : > { %p1024_p2 = pneg %p1023_p1 }
 0x555   : > { %1172 = dma.done.wait (%p1024_p2), %s848_s28, 128  }
 0x556   : > { %1174 = vsyncadd (%p1024_p2), %s848_s28, 4294967168  ;;  %s16_s17 = sadd.s32 1, %s1197_s17   ;;  %s1483_s12 = smov %s1181_s13 }
 0x557   : > { %p13_p3 = scmp.ge.s32.totalorder %s16_s17, 4   ;;  %s1484_s13 = smov %s1185_s14 }
 0x558   : > { %s1485_s14 = smov %s1286_s25  ;;  %s1486_s15 = smov %s1193_s16 }
 0x559   : > { %s1487_s16 = smov %s1489_s20  ;;  %15 = sbr.rel (!%p13_p3) target bundleno = 4 (0x4), region = 81 }
 0x55e   :  { %853 = vsyncpa [#allocation6], 1 }
 0x55f   :  { %855 = vsyncpa [#allocation6 + $0x1], 1 }

</bundles_post_ra>
